<compile_context>
chip_gen: v5e
topology: v5e:2x2
jax: 0.10.0
libtpu: 0.0.40
codegen_flags: <defaults>
</compile_context>

<pallas_src>
import functools
import math
import re

import jax
import jax.numpy as jnp
from jax.experimental import pallas as pl
from jax.experimental.pallas import tpu as pltpu


_SQRT_2_OVER_PI = 0.7978845608028654


def _gelu(x):
    # tanh-form GELU (== torch GELU(approximate='tanh'), <=~3e-4 abs diff from
    # the exact erf form).  tanh lowers to the EUP slot, keeping the VALU (the
    # binding slot of this kernel) free; in bf16 it also packs 2 elem/lane.
    return 0.5 * x * (1.0 + jnp.tanh(_SQRT_2_OVER_PI * (x + 0.044715 * x * x * x)))


# --------------------------------------------------------------------------- #
# Kernel
# --------------------------------------------------------------------------- #
def _daff_kernel(tok_ref, cls_ref,
                 w1_ref, b1_ref, w2_ref, b2_ref, w3_ref, b3_ref,
                 wc_ref, bc_ref, we_ref, be_ref,
                 tok_out_ref, cls_out_ref,
                 padl_ref, padc_ref, padr_ref,
                 *, H, W, matmul_dtype, compute_dtype):
    Bt, HW, C = tok_ref.shape
    HID = w1_ref.shape[1]
    mm = matmul_dtype
    cdt = compute_dtype

    # ---- conv1 (1x1, BN1 folded) + GELU  -------------------------------------
    tok = tok_ref[...].reshape(Bt * HW, C)
    y1 = jnp.dot(tok.astype(mm), w1_ref[...],
                 preferred_element_type=jnp.float32) + b1_ref[...]
    y1 = _gelu(y1).reshape(Bt, H, W, HID)                 # f32, this is also the shortcut

    # Column (+/-1) shifts once, in f32, via XLU rolls + edge masks.  Doing the
    # shift here (and storing three pre-shifted planes) keeps the depthwise
    # loop mask-free and avoids packed-sublane rotates of bf16 data.
    col = jax.lax.broadcasted_iota(jnp.int32, (1, 1, W, HID), 2)
    y1l = jnp.where(col > 0, pltpu.roll(y1, shift=1, axis=2), 0.0)        # x[.., j-1, :]
    y1r = jnp.where(col < W - 1, pltpu.roll(y1, shift=W - 1, axis=2), 0.0)  # x[.., j+1, :]

    # Three H-halo planes in the compute dtype; only the 2 halo rows per plane
    # are re-zeroed each step (cheap outer-dim stores).
    zrow = jnp.zeros((Bt, 1, W, HID), cdt)
    for ref, val in ((padc_ref, y1), (padl_ref, y1l), (padr_ref, y1r)):
        ref[:, 0:1, :, :] = zrow
        ref[:, H + 1:H + 2, :, :] = zrow
        ref[:, 1:H + 1, :, :] = val.astype(cdt)

    # ---- depthwise 3x3 (BN2 folded into the taps), mask-free band MAC -------
    w2 = w2_ref[...]                                      # (9, HID), compute dtype
    dw = None
    shortcut = None
    for ky in range(3):
        c_band = padc_ref[:, ky:ky + H, :, :]             # (Bt, H, W, HID)
        if ky == 1:
            shortcut = c_band                             # == y1 (post conv1/GELU)
        contrib = (padl_ref[:, ky:ky + H, :, :] * w2[3 * ky]
                   + c_band * w2[3 * ky + 1]
                   + padr_ref[:, ky:ky + H, :, :] * w2[3 * ky + 2])
        dw = contrib if dw is None else dw + contrib

    y2 = shortcut + _gelu(dw + b2_ref[...])               # compute dtype
    y2 = y2.reshape(Bt * HW, HID)

    # ---- conv3 (1x1, BN3 folded) ---------------------------------------------
    y3 = jnp.dot(y2.astype(mm), w3_ref[...],
                 preferred_element_type=jnp.float32) + b3_ref[...]
    y3 = y3.reshape(Bt, HW, C)                            # f32
    tok_out_ref[...] = y3.astype(tok_out_ref.dtype)       # sublane/lane-dense store

    # ---- squeeze-excite gate on the cls token (batched over Bt) --------------
    pooled = jnp.sum(y3, axis=1) * (1.0 / HW)             # (Bt, C) f32
    g = jnp.dot(pooled.astype(mm), wc_ref[...],
                preferred_element_type=jnp.float32) + bc_ref[...]
    g = jnp.dot(_gelu(g).astype(mm), we_ref[...],
                preferred_element_type=jnp.float32) + be_ref[...]
    cls_out_ref[...] = (cls_ref[...].astype(jnp.float32)
                        * g.reshape(Bt, 1, C)).astype(cls_out_ref.dtype)


# --------------------------------------------------------------------------- #
# Wrapper helpers
# --------------------------------------------------------------------------- #
def _tpu_generation():
    try:
        kind = jax.devices()[0].device_kind          # e.g. "TPU v5e", "TPU v6e"
        m = re.search(r"(\d+)", kind)
        return int(m.group(1)) if m else None
    except Exception:
        return None


def _vmem_budget_bytes():
    """Generation-aware VMEM budget: 85% of physical capacity (headroom for
    compiler internals).  Falls back to a conservative v7x-sized budget."""
    try:
        cap = int(pltpu.get_tpu_info().vmem_capacity_bytes)
        if cap <= 0:
            raise ValueError
    except Exception:
        cap = 64 * 1024 * 1024
    return int(cap * 0.85)


def _vmem_footprint_bytes(Bt, H, W, C, HID, x_itemsize, mm_size, cdt_size,
                          param_buffers):
    """Rough per-block working-set estimate used to pick Bt and sanity-check
    against the generation's VMEM budget."""
    HW = H * W
    io = 2 * Bt * HW * C * x_itemsize * 2            # tokens in + out, double-buffered
    io += 2 * Bt * C * x_itemsize * 2                # cls in + out
    params = param_buffers * (
        (C * HID + HID * C + C * (C // 4) + (C // 4) * C) * mm_size   # MXU weights
        + 10 * HID * cdt_size                                          # w2', b2'
        + (HID + 2 * C + C // 4) * 4)                                  # f32 biases
    scratch = 3 * Bt * (H + 2) * W * HID * cdt_size  # the three halo planes
    temps = Bt * HW * (HID * (3 * 4 + 2 * cdt_size) + 2 * C * 4)
    return io + params + scratch + temps


def _pick_block_batch(B, HW, footprint_fn, budget, target_rows=512):
    """Largest divisor of B whose estimated footprint fits the VMEM budget,
    preferring the smallest one already giving >= target_rows matmul rows.
    Keeps >= 2 grid steps so both v7x TensorCores get work."""
    best = 1
    for bt in range(1, B + 1):
        if B % bt:
            continue
        if B >= 2 and B // bt < 2:
            break
        if footprint_fn(bt) > budget:
            break
        best = bt
        if bt * HW >= target_rows:
            break
    return best


def _make_param_spec(shape):
    """Grid-invariant param spec; request single buffering (no point double
    buffering weights whose index_map never changes)."""
    nd = len(shape)
    index_map = lambda i, _nd=nd: (0,) * _nd
    try:
        return pl.BlockSpec(shape, index_map, pipeline_mode=pl.Buffered(1)), True
    except Exception:
        return pl.BlockSpec(shape, index_map), False


# --------------------------------------------------------------------------- #
# Public forward
# --------------------------------------------------------------------------- #
def daff_forward(x, params, *, matmul_dtype=None, compute_dtype=None,
                 block_batch=None):
    """Fused DAFF forward.  x: (B, N, C) with N = H*W + 1 (cls token first).

    matmul_dtype:  dtype of the MXU operands of the 1x1 convs / SE linears
                   (default bf16 on every TPU generation; accumulation is f32).
    compute_dtype: dtype of the depthwise / GELU element-wise chain
                   (default bf16 on v6e/v7x, f32 on v5e).
    """
    B, N, C = x.shape
    H = W = int(round(math.sqrt(N - 1)))
    assert H * W + 1 == N, "token count must be a square grid + 1 cls token"
    HW = H * W
    HID = params["w1"].shape[1]

    gen = _tpu_generation()
    if matmul_dtype is None:
        matmul_dtype = jnp.bfloat16
    if compute_dtype is None:
        compute_dtype = jnp.bfloat16 if (gen is None or gen >= 6) else jnp.float32
    mm = jnp.dtype(matmul_dtype)
    cdt = jnp.dtype(compute_dtype)

    # ---- fold the inference-mode BatchNorms into the conv weights/biases -----
    f32 = jnp.float32
    def _f(k):
        return jnp.asarray(params[k], f32)
    s1, t1 = _f("s1"), _f("t1")
    s2, t2 = _f("s2"), _f("t2")
    s3, t3 = _f("s3"), _f("t3")
    w1 = _f("w1") * s1                    # (C, HID): per-out-channel column scale
    b1 = _f("b1") * s1 + t1
    w2 = _f("w2") * s2                    # (9, HID): scale every depthwise tap
    b2 = _f("b2") * s2 + t2
    w3 = _f("w3") * s3                    # (HID, C)
    b3 = _f("b3") * s3 + t3

    staged = [
        w1.astype(mm), b1,                # biases stay f32 (added to f32 MXU acc)
        w2.astype(cdt), b2.astype(cdt),
        w3.astype(mm), b3,
        _f("wc").astype(mm), _f("bc"),
        _f("we").astype(mm), _f("be"),
    ]

    # ---- param specs (single-buffered invariants) -----------------------------
    param_specs = []
    single = True
    for p in staged:
        spec, ok = _make_param_spec(p.shape)
        param_specs.append(spec)
        single = single and ok
    pbuf = 1 if single else 2

    # ---- pick the batch block against the generation's VMEM budget -----------
    budget = _vmem_budget_bytes()
    footprint_fn = functools.partial(
        _vmem_footprint_bytes, H=H, W=W, C=C, HID=HID,
        x_itemsize=x.dtype.itemsize, mm_size=mm.itemsize, cdt_size=cdt.itemsize,
        param_buffers=pbuf)
    Bt = block_batch if block_batch is not None else _pick_block_batch(
        B, HW, footprint_fn, budget)
    assert B % Bt == 0, (B, Bt)
    grid = (B // Bt,)

    # ---- sublane-dense token/cls layout (cls split off in the wrapper) -------
    tokens_in = x[:, 1:, :]               # (B, HW, C) dense slab
    cls_in = x[:, :1, :]                  # (B, 1,  C)

    tok_spec = pl.BlockSpec((Bt, HW, C), lambda i: (i, 0, 0))
    cls_spec = pl.BlockSpec((Bt, 1, C), lambda i: (i, 0, 0))
    in_specs = [tok_spec, cls_spec] + param_specs
    out_specs = [tok_spec, cls_spec]
    out_shape = [jax.ShapeDtypeStruct((B, HW, C), x.dtype),
                 jax.ShapeDtypeStruct((B, 1, C), x.dtype)]

    scratch_shapes = [pltpu.VMEM((Bt, H + 2, W, HID), cdt) for _ in range(3)]

    kernel = functools.partial(_daff_kernel, H=H, W=W,
                               matmul_dtype=mm, compute_dtype=cdt)

    tok_out, cls_out = pl.pallas_call(
        kernel,
        out_shape=out_shape,
        grid_spec=pltpu.PrefetchScalarGridSpec(
            num_scalar_prefetch=0,
            grid=grid,
            in_specs=in_specs,
            out_specs=out_specs,
            scratch_shapes=scratch_shapes),
        compiler_params=pltpu.CompilerParams(
            dimension_semantics=("parallel",),
            vmem_limit_bytes=int(budget)),
    )(tokens_in, cls_in, *staged)

    return jnp.concatenate([cls_out, tok_out], axis=1)


# --------------------------------------------------------------------------- #
# Params + pure-JAX reference (mirrors the PyTorch module)
# --------------------------------------------------------------------------- #
def init_params(key, C, HID, eps=1e-5):
    ks = jax.random.split(key, 22)
    n = iter(range(22))

    def nrm(shape, scale=0.1):
        return scale * jax.random.normal(ks[next(n)], shape, jnp.float32)

    def bn(ch):
        gamma = 1.0 + nrm((1, ch))
        beta = nrm((1, ch))
        mean = nrm((1, ch))
        var = 1.0 + jnp.abs(nrm((1, ch)))
        scale = gamma / jnp.sqrt(var + eps)
        shift = beta - mean * scale
        return scale, shift

    p = {}
    p["w1"] = nrm((C, HID))          # conv1 1x1: (Cin, Cout)
    p["b1"] = nrm((1, HID))
    p["s1"], p["t1"] = bn(HID)
    p["w2"] = nrm((9, HID))          # depthwise 3x3: (ky*3+kx, channel)
    p["b2"] = nrm((1, HID))
    p["s2"], p["t2"] = bn(HID)
    p["w3"] = nrm((HID, C))          # conv3 1x1: (Cin, Cout)
    p["b3"] = nrm((1, C))
    p["s3"], p["t3"] = bn(C)
    p["wc"] = nrm((C, C // 4))       # compress Linear
    p["bc"] = nrm((1, C // 4))
    p["we"] = nrm((C // 4, C))       # excitation Linear
    p["be"] = nrm((1, C))
    return p


def daff_reference(x, params):
    """Pure-JAX NCHW reference mirroring the PyTorch forward (exact erf GELU,
    inference-mode BatchNorm as per-channel scale/shift)."""
    B, N, C = x.shape
    H = W = int(round(math.sqrt(N - 1)))
    HID = params["w1"].shape[1]
    gelu = functools.partial(jax.nn.gelu, approximate=False)

    cls = x[:, :1, :]
    img = jnp.transpose(x[:, 1:, :].reshape(B, H, W, C), (0, 3, 1, 2))   # NCHW

    def conv1x1(y, w_in_out, b):
        return jnp.einsum('bchw,cd->bdhw', y, w_in_out) + b.reshape(1, -1, 1, 1)

    def bn(y, scale, shift):
        return y * scale.reshape(1, -1, 1, 1) + shift.reshape(1, -1, 1, 1)

    y = gelu(bn(conv1x1(img, params["w1"], params["b1"]), params["s1"], params["t1"]))
    shortcut = y

    wdw = jnp.transpose(params["w2"], (1, 0)).reshape(HID, 1, 3, 3)      # OIHW depthwise
    dw = jax.lax.conv_general_dilated(
        y, wdw, window_strides=(1, 1), padding=((1, 1), (1, 1)),
        dimension_numbers=('NCHW', 'OIHW', 'NCHW'), feature_group_count=HID)
    y = gelu(bn(dw + params["b2"].reshape(1, -1, 1, 1), params["s2"], params["t2"]))
    y = shortcut + y
    y = bn(conv1x1(y, params["w3"], params["b3"]), params["s3"], params["t3"])

    weight = jnp.mean(y, axis=(2, 3)).reshape(B, 1, C)
    weight = gelu(weight @ params["wc"] + params["bc"]) @ params["we"] + params["be"]
    cls_out = cls * weight
    tokens_out = jnp.transpose(y.reshape(B, C, H * W), (0, 2, 1))
    return jnp.concatenate([cls_out, tokens_out], axis=1)


if __name__ == "__main__":
    B, C = 2, 32
    HID = C                     # hidden_features defaults to in_features
    H = W = 8
    N = H * W + 1               # 1 cls token + 8x8 patch tokens

    key = jax.random.PRNGKey(0)
    kx, kp = jax.random.split(key)
    x = jax.random.normal(kx, (B, N, C), jnp.float32)
    params = init_params(kp, C, HID)

    ref = daff_reference(x, params)

    # full-precision path: tight check against the exact (erf-GELU) reference
    out_f32 = daff_forward(x, params, matmul_dtype=jnp.float32,
                           compute_dtype=jnp.float32)
    jax.block_until_ready(out_f32)
    assert out_f32.shape == (B, N, C), out_f32.shape
    max_err = float(jnp.max(jnp.abs(out_f32 - ref)))
    assert max_err < 1e-2, f"f32 path mismatch vs reference, max_err={max_err}"

    # default path: bf16 MXU operands everywhere, bf16 element-wise on v6e/v7x
    out_fast = daff_forward(x, params)
    jax.block_until_ready(out_fast)
    assert out_fast.shape == (B, N, C), out_fast.shape
    max_err_fast = float(jnp.max(jnp.abs(out_fast - ref)))
    assert max_err_fast < 1e-1, f"fast path mismatch vs reference, max_err={max_err_fast}"

    print("KERNEL_OK")
</pallas_src>

<mosaic_0001>
module attributes {stable_mosaic.version = 11 : i64} {
  func.func @_daff_kernel(%arg0: i32, %arg1: memref<1x64x32xf32, #tpu.memory_space<vmem>>, %arg2: memref<1x1x32xf32, #tpu.memory_space<vmem>>, %arg3: memref<32x32xf32, #tpu.memory_space<vmem>>, %arg4: memref<1x32xf32, #tpu.memory_space<vmem>>, %arg5: memref<9x32xf32, #tpu.memory_space<vmem>>, %arg6: memref<1x32xf32, #tpu.memory_space<vmem>>, %arg7: memref<32x32xf32, #tpu.memory_space<vmem>>, %arg8: memref<1x32xf32, #tpu.memory_space<vmem>>, %arg9: memref<32x8xf32, #tpu.memory_space<vmem>>, %arg10: memref<1x8xf32, #tpu.memory_space<vmem>>, %arg11: memref<8x32xf32, #tpu.memory_space<vmem>>, %arg12: memref<1x32xf32, #tpu.memory_space<vmem>>, %arg13: memref<1x64x32xf32, #tpu.memory_space<vmem>>, %arg14: memref<1x1x32xf32, #tpu.memory_space<vmem>>, %arg15: memref<1x10x8x32xf32, #tpu.memory_space<vmem>>, %arg16: memref<1x10x8x32xf32, #tpu.memory_space<vmem>>, %arg17: memref<1x10x8x32xf32, #tpu.memory_space<vmem>>) attributes {dimension_semantics = [#tpu.dimension_semantics<parallel>], iteration_bounds = array<i64: 2>, scalar_prefetch = 0 : i64, scratch_operands = 3 : i64, tpu.core_type = #tpu.core_type<tc>, window_params = [{transform_indices = @transform_0, window_bounds = array<i64: 1, 64, 32>}, {transform_indices = @transform_1, window_bounds = array<i64: 1, 1, 32>}, {pipeline_mode = #tpu.pipeline_mode<synchronous>, transform_indices = @transform_2, window_bounds = array<i64: 32, 32>}, {pipeline_mode = #tpu.pipeline_mode<synchronous>, transform_indices = @transform_3, window_bounds = array<i64: 1, 32>}, {pipeline_mode = #tpu.pipeline_mode<synchronous>, transform_indices = @transform_4, window_bounds = array<i64: 9, 32>}, {pipeline_mode = #tpu.pipeline_mode<synchronous>, transform_indices = @transform_5, window_bounds = array<i64: 1, 32>}, {pipeline_mode = #tpu.pipeline_mode<synchronous>, transform_indices = @transform_6, window_bounds = array<i64: 32, 32>}, {pipeline_mode = #tpu.pipeline_mode<synchronous>, transform_indices = @transform_7, window_bounds = array<i64: 1, 32>}, {pipeline_mode = #tpu.pipeline_mode<synchronous>, transform_indices = @transform_8, window_bounds = array<i64: 32, 8>}, {pipeline_mode = #tpu.pipeline_mode<synchronous>, transform_indices = @transform_9, window_bounds = array<i64: 1, 8>}, {pipeline_mode = #tpu.pipeline_mode<synchronous>, transform_indices = @transform_10, window_bounds = array<i64: 8, 32>}, {pipeline_mode = #tpu.pipeline_mode<synchronous>, transform_indices = @transform_11, window_bounds = array<i64: 1, 32>}, {transform_indices = @transform_12, window_bounds = array<i64: 1, 64, 32>}, {transform_indices = @transform_13, window_bounds = array<i64: 1, 1, 32>}]} {
    %c0 = arith.constant 0 : index
    %c0_0 = arith.constant 0 : index
    %c0_1 = arith.constant 0 : index
    %0 = vector.load %arg1[%c0, %c0_0, %c0_1] : memref<1x64x32xf32, #tpu.memory_space<vmem>>, vector<1x64x32xf32>
    %1 = vector.shape_cast %0 : vector<1x64x32xf32> to vector<64x32xf32>
    %c0_2 = arith.constant 0 : index
    %c0_3 = arith.constant 0 : index
    %2 = vector.load %arg3[%c0_2, %c0_3] : memref<32x32xf32, #tpu.memory_space<vmem>>, vector<32x32xf32>
    %cst = arith.constant dense<0.000000e+00> : vector<64x32xf32>
    %3 = tpu.matmul %1, %2, %cst {dimension_numbers = #tpu.dot_dimension_numbers<[1], [0], [0], [1], [0, 0, 1, 1], [], []>} : vector<64x32xf32>, vector<32x32xf32>, vector<64x32xf32> -> vector<64x32xf32>
    %c0_4 = arith.constant 0 : index
    %c0_5 = arith.constant 0 : index
    %4 = vector.load %arg4[%c0_4, %c0_5] : memref<1x32xf32, #tpu.memory_space<vmem>>, vector<1x32xf32>
    %5 = vector.broadcast %4 : vector<1x32xf32> to vector<64x32xf32>
    %6 = arith.addf %3, %5 : vector<64x32xf32>
    %cst_6 = arith.constant 5.000000e-01 : f32
    %7 = vector.broadcast %cst_6 : f32 to vector<64x32xf32>
    %8 = arith.mulf %7, %6 : vector<64x32xf32>
    %cst_7 = arith.constant 4.471500e-02 : f32
    %9 = vector.broadcast %cst_7 : f32 to vector<64x32xf32>
    %10 = arith.mulf %9, %6 : vector<64x32xf32>
    %11 = arith.mulf %10, %6 : vector<64x32xf32>
    %12 = arith.mulf %11, %6 : vector<64x32xf32>
    %13 = arith.addf %6, %12 : vector<64x32xf32>
    %cst_8 = arith.constant 0.797884583 : f32
    %14 = vector.broadcast %cst_8 : f32 to vector<64x32xf32>
    %15 = arith.mulf %14, %13 : vector<64x32xf32>
    %16 = math.tanh %15 : vector<64x32xf32>
    %cst_9 = arith.constant 1.000000e+00 : f32
    %17 = vector.broadcast %cst_9 : f32 to vector<64x32xf32>
    %18 = arith.addf %17, %16 : vector<64x32xf32>
    %19 = arith.mulf %8, %18 : vector<64x32xf32>
    %20 = vector.shape_cast %19 : vector<64x32xf32> to vector<1x8x8x32xf32>
    %21 = tpu.iota {dimensions = array<i32: 2>} : vector<1x1x8x32xi32>
    %c0_i32 = arith.constant 0 : i32
    %22 = vector.broadcast %c0_i32 : i32 to vector<1x1x8x32xi32>
    %23 = arith.cmpi sgt, %21, %22 : vector<1x1x8x32xi32>
    %c1_i32 = arith.constant 1 : i32
    %24 = tpu.dynamic_rotate %20 by %c1_i32 dim 2 : vector<1x8x8x32xf32>, i32 -> vector<1x8x8x32xf32>
    %cst_10 = arith.constant 0.000000e+00 : f32
    %25 = vector.shape_cast %23 : vector<1x1x8x32xi1> to vector<1x1x8x32xi1>
    %26 = vector.broadcast %25 : vector<1x1x8x32xi1> to vector<1x8x8x32xi1>
    %27 = vector.broadcast %cst_10 : f32 to vector<1x8x8x32xf32>
    %28 = arith.select %26, %24, %27 : vector<1x8x8x32xi1>, vector<1x8x8x32xf32>
    %c7_i32 = arith.constant 7 : i32
    %29 = vector.broadcast %c7_i32 : i32 to vector<1x1x8x32xi32>
    %30 = arith.cmpi slt, %21, %29 : vector<1x1x8x32xi32>
    %c7_i32_11 = arith.constant 7 : i32
    %31 = tpu.dynamic_rotate %20 by %c7_i32_11 dim 2 : vector<1x8x8x32xf32>, i32 -> vector<1x8x8x32xf32>
    %cst_12 = arith.constant 0.000000e+00 : f32
    %32 = vector.shape_cast %30 : vector<1x1x8x32xi1> to vector<1x1x8x32xi1>
    %33 = vector.broadcast %32 : vector<1x1x8x32xi1> to vector<1x8x8x32xi1>
    %34 = vector.broadcast %cst_12 : f32 to vector<1x8x8x32xf32>
    %35 = arith.select %33, %31, %34 : vector<1x8x8x32xi1>, vector<1x8x8x32xf32>
    %cst_13 = arith.constant 0.000000e+00 : f32
    %36 = vector.broadcast %cst_13 : f32 to vector<1x1x8x32xf32>
    %c0_14 = arith.constant 0 : index
    %c0_15 = arith.constant 0 : index
    %c0_16 = arith.constant 0 : index
    %c0_17 = arith.constant 0 : index
    %37 = vector.load %arg16[%c0_14, %c0_15, %c0_16, %c0_17] : memref<1x10x8x32xf32, #tpu.memory_space<vmem>>, vector<1x1x8x32xf32>
    tpu.vector_store %arg16[%c0_14, %c0_15, %c0_16, %c0_17], %36 {strides = array<i32>} : memref<1x10x8x32xf32, #tpu.memory_space<vmem>>, vector<1x1x8x32xf32>,
    %c0_18 = arith.constant 0 : index
    %c9 = arith.constant 9 : index
    %c0_19 = arith.constant 0 : index
    %c0_20 = arith.constant 0 : index
    %38 = vector.load %arg16[%c0_18, %c9, %c0_19, %c0_20] : memref<1x10x8x32xf32, #tpu.memory_space<vmem>>, vector<1x1x8x32xf32>
    tpu.vector_store %arg16[%c0_18, %c9, %c0_19, %c0_20], %36 {strides = array<i32>} : memref<1x10x8x32xf32, #tpu.memory_space<vmem>>, vector<1x1x8x32xf32>,
    %c0_21 = arith.constant 0 : index
    %c1 = arith.constant 1 : index
    %c0_22 = arith.constant 0 : index
    %c0_23 = arith.constant 0 : index
    %39 = vector.load %arg16[%c0_21, %c1, %c0_22, %c0_23] : memref<1x10x8x32xf32, #tpu.memory_space<vmem>>, vector<1x8x8x32xf32>
    tpu.vector_store %arg16[%c0_21, %c1, %c0_22, %c0_23], %20 {strides = array<i32>} : memref<1x10x8x32xf32, #tpu.memory_space<vmem>>, vector<1x8x8x32xf32>,
    %c0_24 = arith.constant 0 : index
    %c0_25 = arith.constant 0 : index
    %c0_26 = arith.constant 0 : index
    %c0_27 = arith.constant 0 : index
    %40 = vector.load %arg15[%c0_24, %c0_25, %c0_26, %c0_27] : memref<1x10x8x32xf32, #tpu.memory_space<vmem>>, vector<1x1x8x32xf32>
    tpu.vector_store %arg15[%c0_24, %c0_25, %c0_26, %c0_27], %36 {strides = array<i32>} : memref<1x10x8x32xf32, #tpu.memory_space<vmem>>, vector<1x1x8x32xf32>,
    %c0_28 = arith.constant 0 : index
    %c9_29 = arith.constant 9 : index
    %c0_30 = arith.constant 0 : index
    %c0_31 = arith.constant 0 : index
    %41 = vector.load %arg15[%c0_28, %c9_29, %c0_30, %c0_31] : memref<1x10x8x32xf32, #tpu.memory_space<vmem>>, vector<1x1x8x32xf32>
    tpu.vector_store %arg15[%c0_28, %c9_29, %c0_30, %c0_31], %36 {strides = array<i32>} : memref<1x10x8x32xf32, #tpu.memory_space<vmem>>, vector<1x1x8x32xf32>,
    %c0_32 = arith.constant 0 : index
    %c1_33 = arith.constant 1 : index
    %c0_34 = arith.constant 0 : index
    %c0_35 = arith.constant 0 : index
    %42 = vector.load %arg15[%c0_32, %c1_33, %c0_34, %c0_35] : memref<1x10x8x32xf32, #tpu.memory_space<vmem>>, vector<1x8x8x32xf32>
    tpu.vector_store %arg15[%c0_32, %c1_33, %c0_34, %c0_35], %28 {strides = array<i32>} : memref<1x10x8x32xf32, #tpu.memory_space<vmem>>, vector<1x8x8x32xf32>,
    %c0_36 = arith.constant 0 : index
    %c0_37 = arith.constant 0 : index
    %c0_38 = arith.constant 0 : index
    %c0_39 = arith.constant 0 : index
    %43 = vector.load %arg17[%c0_36, %c0_37, %c0_38, %c0_39] : memref<1x10x8x32xf32, #tpu.memory_space<vmem>>, vector<1x1x8x32xf32>
    tpu.vector_store %arg17[%c0_36, %c0_37, %c0_38, %c0_39], %36 {strides = array<i32>} : memref<1x10x8x32xf32, #tpu.memory_space<vmem>>, vector<1x1x8x32xf32>,
    %c0_40 = arith.constant 0 : index
    %c9_41 = arith.constant 9 : index
    %c0_42 = arith.constant 0 : index
    %c0_43 = arith.constant 0 : index
    %44 = vector.load %arg17[%c0_40, %c9_41, %c0_42, %c0_43] : memref<1x10x8x32xf32, #tpu.memory_space<vmem>>, vector<1x1x8x32xf32>
    tpu.vector_store %arg17[%c0_40, %c9_41, %c0_42, %c0_43], %36 {strides = array<i32>} : memref<1x10x8x32xf32, #tpu.memory_space<vmem>>, vector<1x1x8x32xf32>,
    %c0_44 = arith.constant 0 : index
    %c1_45 = arith.constant 1 : index
    %c0_46 = arith.constant 0 : index
    %c0_47 = arith.constant 0 : index
    %45 = vector.load %arg17[%c0_44, %c1_45, %c0_46, %c0_47] : memref<1x10x8x32xf32, #tpu.memory_space<vmem>>, vector<1x8x8x32xf32>
    tpu.vector_store %arg17[%c0_44, %c1_45, %c0_46, %c0_47], %35 {strides = array<i32>} : memref<1x10x8x32xf32, #tpu.memory_space<vmem>>, vector<1x8x8x32xf32>,
    %c0_48 = arith.constant 0 : index
    %c0_49 = arith.constant 0 : index
    %46 = vector.load %arg5[%c0_48, %c0_49] : memref<9x32xf32, #tpu.memory_space<vmem>>, vector<9x32xf32>
    %c0_50 = arith.constant 0 : index
    %c0_51 = arith.constant 0 : index
    %c0_52 = arith.constant 0 : index
    %c0_53 = arith.constant 0 : index
    %47 = vector.load %arg16[%c0_50, %c0_51, %c0_52, %c0_53] : memref<1x10x8x32xf32, #tpu.memory_space<vmem>>, vector<1x8x8x32xf32>
    %c0_54 = arith.constant 0 : index
    %c0_55 = arith.constant 0 : index
    %c0_56 = arith.constant 0 : index
    %c0_57 = arith.constant 0 : index
    %48 = vector.load %arg15[%c0_54, %c0_55, %c0_56, %c0_57] : memref<1x10x8x32xf32, #tpu.memory_space<vmem>>, vector<1x8x8x32xf32>
    %49 = vector.extract_strided_slice %46 {offsets = [0, 0], sizes = [1, 32], strides = [1, 1]} : vector<9x32xf32> to vector<1x32xf32>
    %50 = vector.shape_cast %49 : vector<1x32xf32> to vector<32xf32>
    %51 = vector.shape_cast %50 : vector<32xf32> to vector<1x1x1x32xf32>
    %52 = vector.broadcast %51 : vector<1x1x1x32xf32> to vector<1x8x8x32xf32>
    %53 = arith.mulf %48, %52 : vector<1x8x8x32xf32>
    %54 = vector.extract_strided_slice %46 {offsets = [1, 0], sizes = [1, 32], strides = [1, 1]} : vector<9x32xf32> to vector<1x32xf32>
    %55 = vector.shape_cast %54 : vector<1x32xf32> to vector<32xf32>
    %56 = vector.shape_cast %55 : vector<32xf32> to vector<1x1x1x32xf32>
    %57 = vector.broadcast %56 : vector<1x1x1x32xf32> to vector<1x8x8x32xf32>
    %58 = arith.mulf %47, %57 : vector<1x8x8x32xf32>
    %59 = arith.addf %53, %58 : vector<1x8x8x32xf32>
    %c0_58 = arith.constant 0 : index
    %c0_59 = arith.constant 0 : index
    %c0_60 = arith.constant 0 : index
    %c0_61 = arith.constant 0 : index
    %60 = vector.load %arg17[%c0_58, %c0_59, %c0_60, %c0_61] : memref<1x10x8x32xf32, #tpu.memory_space<vmem>>, vector<1x8x8x32xf32>
    %61 = vector.extract_strided_slice %46 {offsets = [2, 0], sizes = [1, 32], strides = [1, 1]} : vector<9x32xf32> to vector<1x32xf32>
    %62 = vector.shape_cast %61 : vector<1x32xf32> to vector<32xf32>
    %63 = vector.shape_cast %62 : vector<32xf32> to vector<1x1x1x32xf32>
    %64 = vector.broadcast %63 : vector<1x1x1x32xf32> to vector<1x8x8x32xf32>
    %65 = arith.mulf %60, %64 : vector<1x8x8x32xf32>
    %66 = arith.addf %59, %65 : vector<1x8x8x32xf32>
    %c0_62 = arith.constant 0 : index
    %c1_63 = arith.constant 1 : index
    %c0_64 = arith.constant 0 : index
    %c0_65 = arith.constant 0 : index
    %67 = vector.load %arg16[%c0_62, %c1_63, %c0_64, %c0_65] : memref<1x10x8x32xf32, #tpu.memory_space<vmem>>, vector<1x8x8x32xf32>
    %c0_66 = arith.constant 0 : index
    %c1_67 = arith.constant 1 : index
    %c0_68 = arith.constant 0 : index
    %c0_69 = arith.constant 0 : index
    %68 = vector.load %arg15[%c0_66, %c1_67, %c0_68, %c0_69] : memref<1x10x8x32xf32, #tpu.memory_space<vmem>>, vector<1x8x8x32xf32>
    %69 = vector.extract_strided_slice %46 {offsets = [3, 0], sizes = [1, 32], strides = [1, 1]} : vector<9x32xf32> to vector<1x32xf32>
    %70 = vector.shape_cast %69 : vector<1x32xf32> to vector<32xf32>
    %71 = vector.shape_cast %70 : vector<32xf32> to vector<1x1x1x32xf32>
    %72 = vector.broadcast %71 : vector<1x1x1x32xf32> to vector<1x8x8x32xf32>
    %73 = arith.mulf %68, %72 : vector<1x8x8x32xf32>
    %74 = vector.extract_strided_slice %46 {offsets = [4, 0], sizes = [1, 32], strides = [1, 1]} : vector<9x32xf32> to vector<1x32xf32>
    %75 = vector.shape_cast %74 : vector<1x32xf32> to vector<32xf32>
    %76 = vector.shape_cast %75 : vector<32xf32> to vector<1x1x1x32xf32>
    %77 = vector.broadcast %76 : vector<1x1x1x32xf32> to vector<1x8x8x32xf32>
    %78 = arith.mulf %67, %77 : vector<1x8x8x32xf32>
    %79 = arith.addf %73, %78 : vector<1x8x8x32xf32>
    %c0_70 = arith.constant 0 : index
    %c1_71 = arith.constant 1 : index
    %c0_72 = arith.constant 0 : index
    %c0_73 = arith.constant 0 : index
    %80 = vector.load %arg17[%c0_70, %c1_71, %c0_72, %c0_73] : memref<1x10x8x32xf32, #tpu.memory_space<vmem>>, vector<1x8x8x32xf32>
    %81 = vector.extract_strided_slice %46 {offsets = [5, 0], sizes = [1, 32], strides = [1, 1]} : vector<9x32xf32> to vector<1x32xf32>
    %82 = vector.shape_cast %81 : vector<1x32xf32> to vector<32xf32>
    %83 = vector.shape_cast %82 : vector<32xf32> to vector<1x1x1x32xf32>
    %84 = vector.broadcast %83 : vector<1x1x1x32xf32> to vector<1x8x8x32xf32>
    %85 = arith.mulf %80, %84 : vector<1x8x8x32xf32>
    %86 = arith.addf %79, %85 : vector<1x8x8x32xf32>
    %87 = arith.addf %66, %86 : vector<1x8x8x32xf32>
    %c0_74 = arith.constant 0 : index
    %c2 = arith.constant 2 : index
    %c0_75 = arith.constant 0 : index
    %c0_76 = arith.constant 0 : index
    %88 = vector.load %arg16[%c0_74, %c2, %c0_75, %c0_76] : memref<1x10x8x32xf32, #tpu.memory_space<vmem>>, vector<1x8x8x32xf32>
    %c0_77 = arith.constant 0 : index
    %c2_78 = arith.constant 2 : index
    %c0_79 = arith.constant 0 : index
    %c0_80 = arith.constant 0 : index
    %89 = vector.load %arg15[%c0_77, %c2_78, %c0_79, %c0_80] : memref<1x10x8x32xf32, #tpu.memory_space<vmem>>, vector<1x8x8x32xf32>
    %90 = vector.extract_strided_slice %46 {offsets = [6, 0], sizes = [1, 32], strides = [1, 1]} : vector<9x32xf32> to vector<1x32xf32>
    %91 = vector.shape_cast %90 : vector<1x32xf32> to vector<32xf32>
    %92 = vector.shape_cast %91 : vector<32xf32> to vector<1x1x1x32xf32>
    %93 = vector.broadcast %92 : vector<1x1x1x32xf32> to vector<1x8x8x32xf32>
    %94 = arith.mulf %89, %93 : vector<1x8x8x32xf32>
    %95 = vector.extract_strided_slice %46 {offsets = [7, 0], sizes = [1, 32], strides = [1, 1]} : vector<9x32xf32> to vector<1x32xf32>
    %96 = vector.shape_cast %95 : vector<1x32xf32> to vector<32xf32>
    %97 = vector.shape_cast %96 : vector<32xf32> to vector<1x1x1x32xf32>
    %98 = vector.broadcast %97 : vector<1x1x1x32xf32> to vector<1x8x8x32xf32>
    %99 = arith.mulf %88, %98 : vector<1x8x8x32xf32>
    %100 = arith.addf %94, %99 : vector<1x8x8x32xf32>
    %c0_81 = arith.constant 0 : index
    %c2_82 = arith.constant 2 : index
    %c0_83 = arith.constant 0 : index
    %c0_84 = arith.constant 0 : index
    %101 = vector.load %arg17[%c0_81, %c2_82, %c0_83, %c0_84] : memref<1x10x8x32xf32, #tpu.memory_space<vmem>>, vector<1x8x8x32xf32>
    %102 = vector.extract_strided_slice %46 {offsets = [8, 0], sizes = [1, 32], strides = [1, 1]} : vector<9x32xf32> to vector<1x32xf32>
    %103 = vector.shape_cast %102 : vector<1x32xf32> to vector<32xf32>
    %104 = vector.shape_cast %103 : vector<32xf32> to vector<1x1x1x32xf32>
    %105 = vector.broadcast %104 : vector<1x1x1x32xf32> to vector<1x8x8x32xf32>
    %106 = arith.mulf %101, %105 : vector<1x8x8x32xf32>
    %107 = arith.addf %100, %106 : vector<1x8x8x32xf32>
    %108 = arith.addf %87, %107 : vector<1x8x8x32xf32>
    %c0_85 = arith.constant 0 : index
    %c0_86 = arith.constant 0 : index
    %109 = vector.load %arg6[%c0_85, %c0_86] : memref<1x32xf32, #tpu.memory_space<vmem>>, vector<1x32xf32>
    %110 = vector.shape_cast %109 : vector<1x32xf32> to vector<1x1x1x32xf32>
    %111 = vector.broadcast %110 : vector<1x1x1x32xf32> to vector<1x8x8x32xf32>
    %112 = arith.addf %108, %111 : vector<1x8x8x32xf32>
    %cst_87 = arith.constant 5.000000e-01 : f32
    %113 = vector.broadcast %cst_87 : f32 to vector<1x8x8x32xf32>
    %114 = arith.mulf %113, %112 : vector<1x8x8x32xf32>
    %cst_88 = arith.constant 4.471500e-02 : f32
    %115 = vector.broadcast %cst_88 : f32 to vector<1x8x8x32xf32>
    %116 = arith.mulf %115, %112 : vector<1x8x8x32xf32>
    %117 = arith.mulf %116, %112 : vector<1x8x8x32xf32>
    %118 = arith.mulf %117, %112 : vector<1x8x8x32xf32>
    %119 = arith.addf %112, %118 : vector<1x8x8x32xf32>
    %cst_89 = arith.constant 0.797884583 : f32
    %120 = vector.broadcast %cst_89 : f32 to vector<1x8x8x32xf32>
    %121 = arith.mulf %120, %119 : vector<1x8x8x32xf32>
    %122 = math.tanh %121 : vector<1x8x8x32xf32>
    %cst_90 = arith.constant 1.000000e+00 : f32
    %123 = vector.broadcast %cst_90 : f32 to vector<1x8x8x32xf32>
    %124 = arith.addf %123, %122 : vector<1x8x8x32xf32>
    %125 = arith.mulf %114, %124 : vector<1x8x8x32xf32>
    %126 = arith.addf %67, %125 : vector<1x8x8x32xf32>
    %127 = vector.shape_cast %126 : vector<1x8x8x32xf32> to vector<64x32xf32>
    %c0_91 = arith.constant 0 : index
    %c0_92 = arith.constant 0 : index
    %128 = vector.load %arg7[%c0_91, %c0_92] : memref<32x32xf32, #tpu.memory_space<vmem>>, vector<32x32xf32>
    %cst_93 = arith.constant dense<0.000000e+00> : vector<64x32xf32>
    %129 = tpu.matmul %127, %128, %cst_93 {dimension_numbers = #tpu.dot_dimension_numbers<[1], [0], [0], [1], [0, 0, 1, 1], [], []>} : vector<64x32xf32>, vector<32x32xf32>, vector<64x32xf32> -> vector<64x32xf32>
    %c0_94 = arith.constant 0 : index
    %c0_95 = arith.constant 0 : index
    %130 = vector.load %arg8[%c0_94, %c0_95] : memref<1x32xf32, #tpu.memory_space<vmem>>, vector<1x32xf32>
    %131 = vector.broadcast %130 : vector<1x32xf32> to vector<64x32xf32>
    %132 = arith.addf %129, %131 : vector<64x32xf32>
    %133 = vector.shape_cast %132 : vector<64x32xf32> to vector<1x64x32xf32>
    %c0_96 = arith.constant 0 : index
    %c0_97 = arith.constant 0 : index
    %c0_98 = arith.constant 0 : index
    %134 = vector.load %arg13[%c0_96, %c0_97, %c0_98] : memref<1x64x32xf32, #tpu.memory_space<vmem>>, vector<1x64x32xf32>
    tpu.vector_store %arg13[%c0_96, %c0_97, %c0_98], %133 {strides = array<i32>} : memref<1x64x32xf32, #tpu.memory_space<vmem>>, vector<1x64x32xf32>,
    %cst_99 = arith.constant dense<0.000000e+00> : vector<1x32xf32>
    %135 = vector.multi_reduction <add>, %133, %cst_99 [1] : vector<1x64x32xf32> to vector<1x32xf32>
    %cst_100 = arith.constant 1.562500e-02 : f32
    %136 = vector.broadcast %cst_100 : f32 to vector<1x32xf32>
    %137 = arith.mulf %135, %136 : vector<1x32xf32>
    %c0_101 = arith.constant 0 : index
    %c0_102 = arith.constant 0 : index
    %138 = vector.load %arg9[%c0_101, %c0_102] : memref<32x8xf32, #tpu.memory_space<vmem>>, vector<32x8xf32>
    %cst_103 = arith.constant dense<0.000000e+00> : vector<1x8xf32>
    %139 = tpu.matmul %137, %138, %cst_103 {dimension_numbers = #tpu.dot_dimension_numbers<[1], [0], [0], [1], [0, 0, 1, 1], [], []>} : vector<1x32xf32>, vector<32x8xf32>, vector<1x8xf32> -> vector<1x8xf32>
    %c0_104 = arith.constant 0 : index
    %c0_105 = arith.constant 0 : index
    %140 = vector.load %arg10[%c0_104, %c0_105] : memref<1x8xf32, #tpu.memory_space<vmem>>, vector<1x8xf32>
    %141 = arith.addf %139, %140 : vector<1x8xf32>
    %cst_106 = arith.constant 5.000000e-01 : f32
    %142 = vector.broadcast %cst_106 : f32 to vector<1x8xf32>
    %143 = arith.mulf %142, %141 : vector<1x8xf32>
    %cst_107 = arith.constant 4.471500e-02 : f32
    %144 = vector.broadcast %cst_107 : f32 to vector<1x8xf32>
    %145 = arith.mulf %144, %141 : vector<1x8xf32>
    %146 = arith.mulf %145, %141 : vector<1x8xf32>
    %147 = arith.mulf %146, %141 : vector<1x8xf32>
    %148 = arith.addf %141, %147 : vector<1x8xf32>
    %cst_108 = arith.constant 0.797884583 : f32
    %149 = vector.broadcast %cst_108 : f32 to vector<1x8xf32>
    %150 = arith.mulf %149, %148 : vector<1x8xf32>
    %151 = math.tanh %150 : vector<1x8xf32>
    %cst_109 = arith.constant 1.000000e+00 : f32
    %152 = vector.broadcast %cst_109 : f32 to vector<1x8xf32>
    %153 = arith.addf %152, %151 : vector<1x8xf32>
    %154 = arith.mulf %143, %153 : vector<1x8xf32>
    %c0_110 = arith.constant 0 : index
    %c0_111 = arith.constant 0 : index
    %155 = vector.load %arg11[%c0_110, %c0_111] : memref<8x32xf32, #tpu.memory_space<vmem>>, vector<8x32xf32>
    %cst_112 = arith.constant dense<0.000000e+00> : vector<1x32xf32>
    %156 = tpu.matmul %154, %155, %cst_112 {dimension_numbers = #tpu.dot_dimension_numbers<[1], [0], [0], [1], [0, 0, 1, 1], [], []>} : vector<1x8xf32>, vector<8x32xf32>, vector<1x32xf32> -> vector<1x32xf32>
    %c0_113 = arith.constant 0 : index
    %c0_114 = arith.constant 0 : index
    %157 = vector.load %arg12[%c0_113, %c0_114] : memref<1x32xf32, #tpu.memory_space<vmem>>, vector<1x32xf32>
    %158 = arith.addf %156, %157 : vector<1x32xf32>
    %c0_115 = arith.constant 0 : index
    %c0_116 = arith.constant 0 : index
    %c0_117 = arith.constant 0 : index
    %159 = vector.load %arg2[%c0_115, %c0_116, %c0_117] : memref<1x1x32xf32, #tpu.memory_space<vmem>>, vector<1x1x32xf32>
    %160 = vector.shape_cast %158 : vector<1x32xf32> to vector<1x1x32xf32>
    %161 = arith.mulf %159, %160 : vector<1x1x32xf32>
    %c0_118 = arith.constant 0 : index
    %c0_119 = arith.constant 0 : index
    %c0_120 = arith.constant 0 : index
    %162 = vector.load %arg14[%c0_118, %c0_119, %c0_120] : memref<1x1x32xf32, #tpu.memory_space<vmem>>, vector<1x1x32xf32>
    tpu.vector_store %arg14[%c0_118, %c0_119, %c0_120], %161 {strides = array<i32>} : memref<1x1x32xf32, #tpu.memory_space<vmem>>, vector<1x1x32xf32>,
    return
  }
  func.func @transform_0(%arg0: i32) -> (i32, i32, i32) {
    %c0_i32 = arith.constant 0 : i32
    %c0_i32_0 = arith.constant 0 : i32
    %c0_i32_1 = arith.constant 0 : i32
    return %arg0, %c0_i32, %c0_i32_0 : i32, i32, i32
  }
  func.func @transform_1(%arg0: i32) -> (i32, i32, i32) {
    %c0_i32 = arith.constant 0 : i32
    %c0_i32_0 = arith.constant 0 : i32
    %c0_i32_1 = arith.constant 0 : i32
    return %arg0, %c0_i32, %c0_i32_0 : i32, i32, i32
  }
  func.func @transform_2(%arg0: i32) -> (i32, i32) {
    %c0_i32 = arith.constant 0 : i32
    %c0_i32_0 = arith.constant 0 : i32
    %c0_i32_1 = arith.constant 0 : i32
    return %c0_i32, %c0_i32_0 : i32, i32
  }
  func.func @transform_3(%arg0: i32) -> (i32, i32) {
    %c0_i32 = arith.constant 0 : i32
    %c0_i32_0 = arith.constant 0 : i32
    %c0_i32_1 = arith.constant 0 : i32
    return %c0_i32, %c0_i32_0 : i32, i32
  }
  func.func @transform_4(%arg0: i32) -> (i32, i32) {
    %c0_i32 = arith.constant 0 : i32
    %c0_i32_0 = arith.constant 0 : i32
    %c0_i32_1 = arith.constant 0 : i32
    return %c0_i32, %c0_i32_0 : i32, i32
  }
  func.func @transform_5(%arg0: i32) -> (i32, i32) {
    %c0_i32 = arith.constant 0 : i32
    %c0_i32_0 = arith.constant 0 : i32
    %c0_i32_1 = arith.constant 0 : i32
    return %c0_i32, %c0_i32_0 : i32, i32
  }
  func.func @transform_6(%arg0: i32) -> (i32, i32) {
    %c0_i32 = arith.constant 0 : i32
    %c0_i32_0 = arith.constant 0 : i32
    %c0_i32_1 = arith.constant 0 : i32
    return %c0_i32, %c0_i32_0 : i32, i32
  }
  func.func @transform_7(%arg0: i32) -> (i32, i32) {
    %c0_i32 = arith.constant 0 : i32
    %c0_i32_0 = arith.constant 0 : i32
    %c0_i32_1 = arith.constant 0 : i32
    return %c0_i32, %c0_i32_0 : i32, i32
  }
  func.func @transform_8(%arg0: i32) -> (i32, i32) {
    %c0_i32 = arith.constant 0 : i32
    %c0_i32_0 = arith.constant 0 : i32
    %c0_i32_1 = arith.constant 0 : i32
    return %c0_i32, %c0_i32_0 : i32, i32
  }
  func.func @transform_9(%arg0: i32) -> (i32, i32) {
    %c0_i32 = arith.constant 0 : i32
    %c0_i32_0 = arith.constant 0 : i32
    %c0_i32_1 = arith.constant 0 : i32
    return %c0_i32, %c0_i32_0 : i32, i32
  }
  func.func @transform_10(%arg0: i32) -> (i32, i32) {
    %c0_i32 = arith.constant 0 : i32
    %c0_i32_0 = arith.constant 0 : i32
    %c0_i32_1 = arith.constant 0 : i32
    return %c0_i32, %c0_i32_0 : i32, i32
  }
  func.func @transform_11(%arg0: i32) -> (i32, i32) {
    %c0_i32 = arith.constant 0 : i32
    %c0_i32_0 = arith.constant 0 : i32
    %c0_i32_1 = arith.constant 0 : i32
    return %c0_i32, %c0_i32_0 : i32, i32
  }
  func.func @transform_12(%arg0: i32) -> (i32, i32, i32) {
    %c0_i32 = arith.constant 0 : i32
    %c0_i32_0 = arith.constant 0 : i32
    %c0_i32_1 = arith.constant 0 : i32
    return %arg0, %c0_i32, %c0_i32_0 : i32, i32, i32
  }
  func.func @transform_13(%arg0: i32) -> (i32, i32, i32) {
    %c0_i32 = arith.constant 0 : i32
    %c0_i32_0 = arith.constant 0 : i32
    %c0_i32_1 = arith.constant 0 : i32
    return %arg0, %c0_i32, %c0_i32_0 : i32, i32, i32
  }
}

</mosaic_0001>

<bundles_post_ra>
// kernel: tpu_custom_call.1
= control target key start
LH: loop header
LB: loop body
LE: loop exit
PB: predicated region body
PF: predicated region fallthrough
CT: control target
= control target key end

     0   :  { %s2073_s0 = inlined_call_operand.vmem [shape: f32[2,64,32], index: 0, kind: input, shape index: {}]   ;;  %s2074_s1 = inlined_call_operand.vmem [shape: f32[2,1,32], index: 1, kind: input, shape index: {}]   ;;  %s2075_s2 = inlined_call_operand.vmem [shape: f32[32,32], index: 2, kind: input, shape index: {}]   ;;  %s2076_s3 = inlined_call_operand.vmem [shape: f32[1,32], index: 3, kind: input, shape index: {}]   ;;  %s2077_s4 = inlined_call_operand.vmem [shape: f32[9,32], index: 4, kind: input, shape index: {}]   ;;  %s2078_s5 = inlined_call_operand.vmem [shape: f32[1,32], index: 5, kind: input, shape index: {}]   ;;  %s2079_s6 = inlined_call_operand.vmem [shape: f32[32,32], index: 6, kind: input, shape index: {}]   ;;  %s2080_s7 = inlined_call_operand.vmem [shape: f32[1,32], index: 7, kind: input, shape index: {}]   ;;  %s2081_s8 = inlined_call_operand.vmem [shape: f32[32,8], index: 8, kind: input, shape index: {}]   ;;  %s2082_s9 = inlined_call_operand.vmem [shape: f32[1,8], index: 9, kind: input, shape index: {}]   ;;  %s2083_s10 = inlined_call_operand.vmem [shape: f32[8,32], index: 10, kind: input, shape index: {}]   ;;  %s2084_s11 = inlined_call_operand.vmem [shape: f32[1,32], index: 11, kind: input, shape index: {}]   ;;  %s2085_s12 = inlined_call_operand.vmem [shape: f32[2,64,32], index: 12, kind: output, shape index: {0}]   ;;  %s2086_s13 = inlined_call_operand.hbm [shape: f32[2,1,32], index: 13, kind: output, shape index: {1}]  }
   0x1   :  { %2087 = sst [smem:[#allocation9_spill]] %s2073_s0 }
   0x2   :  { %2088 = sst [smem:[#allocation10_spill]] %s2075_s2 }
   0x3   :  { %2089 = sst [smem:[#allocation11_spill]] %s2076_s3 }
   0x4   :  { %2090 = sst [smem:[#allocation12_spill]] %s2077_s4 }
   0x5   :  { %19 = vsyncpa [#allocation6], 0 }
   0x6   :  { %21 = vsyncpa [#allocation6 + $0x1], 0  ;;  %s1540_s25 = smov 0   ;;  %s1542_s26 = smov 0  }
   0x7   :  { %s1544_s27 = smov 0   ;;  %s1546_s28 = smov 0  }
   0x8 LB: > { %s1561_s29 = sadd.s32 4294967295, %s1467_s28   ;;  %s1289_s30 = sadd.s32 4294967294, %s1467_s28   ;;  %s1467_s28 = sphi %s1546_s28, %s2102_s28   ;;  %s1463_s27 = sphi %s1544_s27, %s2101_s27   ;;  %s1459_s26 = sphi %s1542_s26, %s2100_s26   ;;  %s1455_s25 = sphi %s1540_s25, %s2099_s25  }
   0x9   : > { %s1565_s14 = sadd.s32 1, %s1467_s28   ;;  %s322_s15 = sadd.s32 1, %s1463_s27 }
   0xa   : > { %s319_s16 = ssub.s32 %s1467_s28, %s1565_s14  ;;  %p332_p0 = scmp.ne.s32.totalorder %s1463_s27, %s1459_s26 }
   0xb   : > { %p320_p1 = scmp.eq.s32.totalorder %s319_s16, 0  ;;  %p333_p2 = scmp.eq.s32.totalorder %s1561_s29, 1 }
   0xc   : > { %p338_p3 = scmp.ne.s32.totalorder %s1459_s26, %s1455_s25  ;;  %p339_p4 = scmp.eq.s32.totalorder %s1289_s30, 1 }
   0xd   : > { %s1576_s17 = scalar_select %p320_p1, %s1463_s27, %s322_s15  }
   0xe   : > { %p1578_p5 = por %p333_p2, %p332_p0  ;;  %p1582_p6 = por %p339_p4, %p338_p3 }
   0xf   : > { %2091 = sst [smem:[#allocation8_spill]] %s1576_s17  ;;  %p1292_p7 = scmp.ge.s32.totalorder %s1467_s28, 1 }
  0x10   : > { %p401_p8 = scmp.lt.s32.totalorder %s1467_s28, 3 }
  0x12   : > { %p402_p9 = pnand %p1292_p7, %p401_p8 }
  0x13   : > { %s2094_s2 = sld [smem:[#allocation10_spill]] (!%p402_p9)  ;;  %p452_p10 = scmp.lt.s32.totalorder (!%p402_p9), %s1561_s29, 1 }
  0x14   : > { %405 = sbr.rel (%p402_p9) target bundleno = 724 (0x2d4), region = 68  ;;  %s2095_s0 = sld [smem:[#allocation9_spill]] (!%p402_p9) }
  0x15   : > { %s2096_s3 = sld [smem:[#allocation11_spill]] (!%p402_p9) }
  0x16   : > { %s2097_s4 = sld [smem:[#allocation12_spill]] (!%p402_p9) }
  0x19   : > { %v476_v0 = vld [vmem:[%s2094_s2 + $0x18] sm:$0xff]  ;;  %v475_v1 = vld [vmem:[%s2094_s2 + $0x10] sm:$0xff]  ;;  %v474_v2 = vld [vmem:[%s2094_s2 + $0x8] sm:$0xff]  ;;  %s1599_s15 = scalar_select %p452_p10, %s1561_s29, 1  ;;  %vm481_vm0 = vcmask 261120   ;;  %v1469_v13 = vmov 0.0   ;;  %v619_v25 = vlaneseq }
  0x1a   : > { %518 = vmatpush.msra.mxu0 %v476_v0  ;;  %1319 = vmatpush.msra.mxu3 %v476_v0  ;;  %v473_v3 = vld [vmem:[%s2094_s2] sm:$0xff]  ;;  %659 = vst.msk [vmem:[#allocation3] sm:$0xff] %vm481_vm0, %v1469_v13  ;;  %vm1151_vm3 = vcmask 64512   ;;  %vm1177_vm4 = vcmask 253952  }
  0x1b   : > { %s1317_s21 = sshll.u32 %s1599_s15, 6  ;;  %v1621_v12 = vld [vmem:[%s2096_s3] ss:$0 sm:$0xff]  ;;  %671 = vst.msk [vmem:[#allocation2] sm:$0xff] %vm481_vm0, %v1469_v13  ;;  %v1636_v31 = vshrl.u32 %v619_v25, 7  ;;  %v1012_v25 = vld [vmem:[%s2079_s6 + $0x18] sm:$0xff]  ;;  %s459_s24 = scalar_lea.vmem %s2074_s1, %s1599_s15 }
  0x1c   : > { %519 = vmatpush.msra.mxu0 %v475_v1  ;;  %1320 = vmatpush.msra.mxu3 %v475_v1  ;;  %s456_s17 = scalar_lea.vmem %s2095_s0, %s1317_s21  ;;  %683 = vst.msk [vmem:[#allocation4] sm:$0xff] %vm481_vm0, %v1469_v13  ;;  %v1645_v37 = vld [vmem:[%s2097_s4] sm:$0xff]  ;;  %s1989_s23 = scalar_lea.vmem %s2085_s12, %s1317_s21 }
  0x1d   : > { %v465_v4 = vld [vmem:[%s456_s17] sm:$0xff]  ;;  %v470_v5 = vld [vmem:[%s456_s17 + $0x28] sm:$0xff]  ;;  %v471_v7 = vld [vmem:[%s456_s17 + $0x30] sm:$0xff]  ;;  %661 = vst.msk [vmem:[#allocation3 + $0x48] sm:$0xff] %vm481_vm0, %v1469_v13  ;;  %v1650_v41 = vperm.slane %v1645_v37, 0  ;;  %vm621_vm1 = vcmp.gt.s32.totalorder %v1636_v31, 0  ;;  %1053 = vmatpush.msra.mxu1 %v1012_v25  ;;  %1323 = vmatpush.msra.mxu2 %v1012_v25 }
  0x1e   : > { %520 = vmatpush.msra.mxu0 %v474_v2  ;;  %1321 = vmatpush.msra.mxu3 %v474_v2  ;;  %v466_v6 = vld [vmem:[%s456_s17 + $0x8] sm:$0xff]  ;;  %v467_v8 = vld [vmem:[%s456_s17 + $0x10] sm:$0xff]  ;;  %v472_v9 = vld [vmem:[%s456_s17 + $0x38] sm:$0xff]  ;;  %673 = vst.msk [vmem:[#allocation2 + $0x48] sm:$0xff] %vm481_vm0, %v1469_v13  ;;  %vm640_vm2 = vcmp.lt.s32.totalorder %v1636_v31, 7  ;;  %v1659_v48 = vperm.slane %v1645_v37, 1 }
  0x1f   : > { %v468_v10 = vld [vmem:[%s456_s17 + $0x18] sm:$0xff]  ;;  %v469_v11 = vld [vmem:[%s456_s17 + $0x20] sm:$0xff]  ;;  %685 = vst.msk [vmem:[#allocation4 + $0x48] sm:$0xff] %vm481_vm0, %v1469_v13  ;;  %v1663_v53 = vperm.slane %v1645_v37, 2  ;;  %v1670_v60 = vperm.slane %v1645_v37, 3  ;;  %v1673_v61 = vperm.slane %v1645_v37, 4  ;;  %s1196_s17 = scalar_lea.hbm %s2086_s13, %s1561_s29 }
  0x20   : > { %521 = vmatpush.msra.mxu0 %v473_v3  ;;  %1322 = vmatpush.msra.mxu3 %v473_v3  ;;  %v1681_v1 = vperm.slane %v1645_v37, 5 }
  0x21   : > { %1297 = vmatmul.msk.f32.vlgmr.msra.gmra.mxu0 %vm481_vm0, %v465_v4  ;;  %1302 = vmatmul.msk.f32.vlgmr.msra.gmra.mxu3 %vm481_vm0, %v470_v5  ;;  %v697_v43 = vld [vmem:[#allocation3] sm:$0xff] }
  0x22   : > { %v705_v44 = vld [vmem:[#allocation2] sm:$0xff]  ;;  %v723_v56 = vmul.f32 %v1659_v48, %v697_v43 }
  0x23   : > { %v739_v52 = vld [vmem:[#allocation4] sm:$0xff]  ;;  %v714_v55 = vmul.f32 %v1650_v41, %v705_v44 }
  0x24   : > { %v748_v0 = vmul.f32 %v1663_v53, %v739_v52 }
  0x29   : > { %1298 = vmatmul.msk.f32.gmra.mxu0 %vm481_vm0, %v466_v6  ;;  %1303 = vmatmul.msk.f32.gmra.mxu3 %vm481_vm0, %v471_v7 }
  0x31   : > { %1299 = vmatmul.msk.f32.gmra.mxu0 %vm481_vm0, %v467_v8  ;;  %1304 = vmatmul.msk.f32.gmra.mxu3 %vm481_vm0, %v472_v9 }
  0x39   : > { %1300 = vmatmul.msk.f32.gmra.mxu0 %vm481_vm0, %v468_v10 }
  0x41   : > { %1301 = vmatmul.msk.f32.gmra.mxu0 %vm481_vm0, %v469_v11  ;;  %v731_v11 = vadd.f32 %v723_v56, %v714_v55 }
  0x9e   : > { %v523_v14 = vpop.f32.mrf.mxu0 }
  0x9f   : > { %v524_v15 = vadd.f32 %v1621_v12, %v523_v14 }
  0xa1   : > { %v555_v16 = vmul.f32 0.044715, %v524_v15  ;;  %v547_v49 = vmul.f32 0.5, %v524_v15 }
  0xa3   : > { %v563_v17 = vmul.f32 %v555_v16, %v524_v15 }
  0xa4   : > { %v538_v18 = vpop.f32.mrf.mxu3 }
  0xa5   : > { %v571_v19 = vmul.f32 %v563_v17, %v524_v15  ;;  %v539_v20 = vadd.f32 %v1621_v12, %v538_v18 }
  0xa6   : > { %v526_v21 = vpop.f32.mrf.mxu0 }
  0xa7   : > { %v579_v22 = vadd.f32 %v571_v19, %v524_v15  ;;  %v560_v23 = vmul.f32 0.044715, %v539_v20  ;;  %v1632_v24 = vadd.f32 %v1621_v12, %v526_v21  ;;  %v552_v4 = vmul.f32 0.5, %v539_v20 }
  0xa9   : > { %v587_v26 = vmul.f32 0.7978846, %v579_v22  ;;  %v568_v27 = vmul.f32 %v560_v23, %v539_v20  ;;  %v556_v28 = vmul.f32 0.044715, %v1632_v24  ;;  %v548_v18 = vmul.f32 0.5, %v1632_v24 }
  0xab   : > { %1371 = vtanh.f32 %v587_v26  ;;  %v576_v29 = vmul.f32 %v568_v27, %v539_v20  ;;  %v564_v30 = vmul.f32 %v556_v28, %v1632_v24  ;;  %v1011_v26 = vld [vmem:[%s2079_s6 + $0x10] sm:$0xff]  ;;  %v1708_v28 = vperm.slane %v1645_v37, 6 }
  0xac   : > { %v541_v32 = vpop.f32.mrf.mxu3  ;;  %1054 = vmatpush.msra.mxu1 %v1011_v26  ;;  %1324 = vmatpush.msra.mxu2 %v1011_v26 }
  0xad   : > { %v584_v33 = vadd.f32 %v576_v29, %v539_v20  ;;  %v572_v34 = vmul.f32 %v564_v30, %v1632_v24  ;;  %v1640_v35 = vadd.f32 %v1621_v12, %v541_v32  ;;  %v1711_v29 = vperm.slane %v1645_v37, 7  ;;  %v1009_v37 = vld [vmem:[%s2079_s6] sm:$0xff] }
  0xae   : > { %v529_v36 = vpop.f32.mrf.mxu0 }
  0xaf   : > { %v592_v38 = vmul.f32 0.7978846, %v584_v33  ;;  %v580_v39 = vadd.f32 %v572_v34, %v1632_v24  ;;  %v561_v40 = vmul.f32 0.044715, %v1640_v35  ;;  %v1655_v42 = vadd.f32 %v1621_v12, %v529_v36  ;;  %v1010_v34 = vld [vmem:[%s2079_s6 + $0x8] sm:$0xff] }
  0xb0   : > { %v553_v36 = vmul.f32 0.5, %v1640_v35  ;;  %1055 = vmatpush.msra.mxu1 %v1010_v34  ;;  %1325 = vmatpush.msra.mxu2 %v1010_v34 }
  0xb1   : > { %v1372_v45 = vpop.eup %1371  ;;  %1373 = vtanh.f32 %v592_v38  ;;  %v588_v46 = vmul.f32 0.7978846, %v580_v39  ;;  %v569_v47 = vmul.f32 %v561_v40, %v1640_v35  ;;  %v557_v51 = vmul.f32 0.044715, %v1655_v42 }
  0xb2   : > { %v603_v50 = vadd.f32 1.0, %v1372_v45  ;;  %v1723_v40 = vadd.f32 %v748_v0, %v731_v11  ;;  %1056 = vmatpush.msra.mxu1 %v1009_v37  ;;  %1326 = vmatpush.msra.mxu2 %v1009_v37 }
  0xb3   : > { %1375 = vtanh.f32 %v588_v46  ;;  %v577_v54 = vmul.f32 %v569_v47, %v1640_v35  ;;  %v565_v58 = vmul.f32 %v557_v51, %v1655_v42 }
  0xb4   : > { %v611_v57 = vmul.f32 %v603_v50, %v547_v49  ;;  %v544_v59 = vpop.f32.mrf.mxu3  ;;  %v549_v50 = vmul.f32 0.5, %v1655_v42 }
  0xb5   : > { %v585_v62 = vadd.f32 %v577_v54, %v1640_v35  ;;  %v1677_v63 = vadd.f32 %v1621_v12, %v544_v59  ;;  %v573_v5 = vmul.f32 %v565_v58, %v1655_v42 }
  0xb6   : > { %v622_v2 = vrot.slane %v611_v57, 7  ;;  %v641_v3 = vrot.slane %v611_v57, 1  ;;  %663 = vst.msk [vmem:[#allocation3 + $0x8] sm:$0xff] %vm481_vm0, %v611_v57  ;;  %v532_v6 = vpop.f32.mrf.mxu0 }
  0xb7   : > { %v1374_v7 = vpop.eup %1373  ;;  %v593_v8 = vmul.f32 0.7978846, %v585_v62  ;;  %v562_v9 = vmul.f32 0.044715, %v1677_v63  ;;  %v1687_v10 = vadd.f32 %v1621_v12, %v532_v6  ;;  %v581_v16 = vadd.f32 %v573_v5, %v1655_v42 }
  0xb8   : > { %v632_v13 = vsel %vm621_vm1, %v622_v2, 0.0  ;;  %v651_v14 = vsel %vm640_vm2, %v641_v3, 0.0  ;;  %v608_v15 = vadd.f32 1.0, %v1374_v7  ;;  %v554_v58 = vmul.f32 0.5, %v1677_v63 }
  0xb9   : > { %v1376_v17 = vpop.eup %1375  ;;  %675 = vst.msk [vmem:[#allocation2 + $0x8] sm:$0xff] %vm481_vm0, %v632_v13  ;;  %1377 = vtanh.f32 %v593_v8  ;;  %v570_v19 = vmul.f32 %v562_v9, %v1677_v63  ;;  %v558_v20 = vmul.f32 0.044715, %v1687_v10  ;;  %v589_v23 = vmul.f32 0.7978846, %v581_v16 }
  0xba   : > { %687 = vst.msk [vmem:[#allocation4 + $0x8] sm:$0xff] %vm481_vm0, %v651_v14  ;;  %v616_v21 = vmul.f32 %v608_v15, %v552_v4  ;;  %v604_v22 = vadd.f32 1.0, %v1376_v17  ;;  %v550_v3 = vmul.f32 0.5, %v1687_v10 }
  0xbb   : > { %v578_v24 = vmul.f32 %v570_v19, %v1677_v63  ;;  %v566_v27 = vmul.f32 %v558_v20, %v1687_v10  ;;  %1379 = vtanh.f32 %v589_v23  ;;  %v1770_v23 = vld [vmem:[%s2097_s4 + $0x8] ss:$0 sm:$0xff]  ;;  %s1200_s4 = sshll.u32 %s1196_s17, 4  ;;  %s1201_s4 = int_to_ptr.hbm [resolvable:$true] %s1200_s4 }
  0xbc   : > { %v627_v30 = vrot.slane %v616_v21, 7  ;;  %v646_v32 = vrot.slane %v616_v21, 1  ;;  %668 = vst.msk [vmem:[#allocation3 + $0x30] sm:$0xff] %vm481_vm0, %v616_v21  ;;  %v612_v33 = vmul.f32 %v604_v22, %v548_v18  ;;  %s1419_s20 = sshra.s32 %s1201_s4, 4  ;;  %s1420_s20 = int_to_ptr.hbm [resolvable:$true] %s1419_s20 }
  0xbd   : > { %v586_v38 = vadd.f32 %v578_v24, %v1677_v63  ;;  %v574_v39 = vmul.f32 %v566_v27, %v1687_v10  ;;  %v1730_v47 = vld [vmem:[#allocation3 + $0x8] sm:$0xff]  ;;  %s1421_s29 = scalar_lea.hbm %s1420_s20, 1  ;;  %p1426_p0 = scmp.lt.s32.totalorder %s1420_s20, %s2086_s13 }
  0xbe   : > { %v637_v43 = vsel %vm621_vm1, %v627_v30, 0.0  ;;  %v656_v44 = vsel %vm640_vm2, %v646_v32, 0.0  ;;  %v623_v45 = vrot.slane %v612_v33, 7  ;;  %v642_v35 = vrot.slane %v612_v33, 1  ;;  %664 = vst.msk [vmem:[#allocation3 + $0x10] sm:$0xff] %vm481_vm0, %v612_v33  ;;  %v535_v46 = vpop.f32.mrf.mxu0  ;;  %p1422_p11 = scmp.ne.s32.totalorder %s1420_s20, %s1421_s29 }
  0xbf   : > { %v1378_v49 = vpop.eup %1377  ;;  %680 = vst.msk [vmem:[#allocation2 + $0x30] sm:$0xff] %vm481_vm0, %v637_v43  ;;  %v594_v51 = vmul.f32 0.7978846, %v586_v38  ;;  %v582_v52 = vadd.f32 %v574_v39, %v1687_v10  ;;  %v1736_v54 = vadd.f32 %v1621_v12, %v535_v46  ;;  %v790_v62 = vmul.f32 %v1673_v61, %v1730_v47 }
  0xc0   : > { %692 = vst.msk [vmem:[#allocation4 + $0x30] sm:$0xff] %vm481_vm0, %v656_v44  ;;  %v633_v55 = vsel %vm621_vm1, %v623_v45, 0.0  ;;  %v652_v56 = vsel %vm640_vm2, %v642_v35, 0.0  ;;  %v609_v57 = vadd.f32 1.0, %v1378_v49  ;;  %v772_v59 = vld [vmem:[#allocation2 + $0x8] sm:$0xff]  ;;  %v724_v8 = vmul.f32 %v1730_v47, %v1659_v48  ;;  %p1423_p12 = pnand %p1422_p11, %p1578_p5 }
  0xc1   : > { %676 = vst.msk [vmem:[#allocation2 + $0x10] sm:$0xff] %vm481_vm0, %v633_v55  ;;  %1381 = vtanh.f32 %v594_v51  ;;  %v590_v42 = vmul.f32 0.7978846, %v582_v52  ;;  %v559_v12 = vmul.f32 0.044715, %v1736_v54  ;;  %v1380_v0 = vpop.eup %1379  ;;  %v781_v63 = vmul.f32 %v1670_v60, %v772_v59  ;;  %v806_v4 = vld [vmem:[#allocation4 + $0x8] sm:$0xff] }
  0xc2   : > { %688 = vst.msk [vmem:[#allocation4 + $0x10] sm:$0xff] %vm481_vm0, %v652_v56  ;;  %v617_v2 = vmul.f32 %v609_v57, %v553_v36  ;;  %v715_v5 = vmul.f32 %v772_v59, %v1650_v41  ;;  %v605_v6 = vadd.f32 1.0, %v1380_v0  ;;  %v815_v14 = vmul.f32 %v1681_v1, %v806_v4  ;;  %v1802_v0 = vld [vmem:[%s2078_s5] ss:$0 sm:$0xff]  ;;  %p1424_p13 = pneg %p1423_p12 }
  0xc3   : > { %1383 = vtanh.f32 %v590_v42  ;;  %v567_v7 = vmul.f32 %v559_v12, %v1736_v54  ;;  %v1755_v9 = vld [vmem:[#allocation3 + $0x30] sm:$0xff]  ;;  %v798_v10 = vadd.f32 %v790_v62, %v781_v63  ;;  %v749_v19 = vmul.f32 %v806_v4, %v1663_v53 }
  0xc4   : > { %v628_v11 = vrot.slane %v617_v2, 7  ;;  %v647_v13 = vrot.slane %v617_v2, 1  ;;  %669 = vst.msk [vmem:[#allocation3 + $0x38] sm:$0xff] %vm481_vm0, %v617_v2  ;;  %v613_v15 = vmul.f32 %v605_v6, %v549_v50  ;;  %v732_v18 = vadd.f32 %v724_v8, %v715_v5 }
  0xc5   : > { %v575_v16 = vmul.f32 %v567_v7, %v1736_v54  ;;  %v1760_v17 = vld [vmem:[#allocation3 + $0x10] sm:$0xff]  ;;  %v823_v22 = vadd.f32 %v815_v14, %v798_v10  ;;  %v795_v25 = vmul.f32 %v1673_v61, %v1755_v9 }
  0xc6   : > { %v638_v20 = vsel %vm621_vm1, %v628_v11, 0.0  ;;  %v657_v21 = vsel %vm640_vm2, %v647_v13, 0.0  ;;  %v624_v24 = vrot.slane %v613_v15, 7  ;;  %v643_v27 = vrot.slane %v613_v15, 1  ;;  %665 = vst.msk [vmem:[#allocation3 + $0x18] sm:$0xff] %vm481_vm0, %v613_v15  ;;  %v1793_v52 = vld [vmem:[#allocation2 + $0x30] sm:$0xff] }
  0xc7   : > { %v1382_v26 = vpop.eup %1381  ;;  %681 = vst.msk [vmem:[#allocation2 + $0x38] sm:$0xff] %vm481_vm0, %v638_v20  ;;  %v583_v30 = vadd.f32 %v575_v16, %v1736_v54  ;;  %v867_v32 = vmul.f32 %v1711_v29, %v1760_v17  ;;  %v831_v34 = vadd.f32 %v823_v22, %v1723_v40  ;;  %v791_v38 = vmul.f32 %v1760_v17, %v1673_v61  ;;  %v1807_v5 = vld [vmem:[#allocation4 + $0x30] sm:$0xff] }
  0xc8   : > { %693 = vst.msk [vmem:[#allocation4 + $0x38] sm:$0xff] %vm481_vm0, %v657_v21  ;;  %v610_v33 = vadd.f32 1.0, %v1382_v26  ;;  %v849_v36 = vld [vmem:[#allocation2 + $0x10] sm:$0xff]  ;;  %v725_v39 = vmul.f32 %v1760_v17, %v1659_v48  ;;  %v634_v43 = vsel %vm621_vm1, %v624_v24, 0.0  ;;  %v653_v44 = vsel %vm640_vm2, %v643_v27, 0.0 }
  0xc9   : > { %v1384_v37 = vpop.eup %1383  ;;  %v591_v45 = vmul.f32 0.7978846, %v583_v30  ;;  %v858_v35 = vmul.f32 %v1708_v28, %v849_v36  ;;  %v884_v40 = vld [vmem:[#allocation4 + $0x10] sm:$0xff]  ;;  %677 = vst.msk [vmem:[#allocation2 + $0x18] sm:$0xff] %vm481_vm0, %v634_v43  ;;  %v782_v51 = vmul.f32 %v849_v36, %v1670_v60  ;;  %v716_v57 = vmul.f32 %v849_v36, %v1650_v41 }
  0xca   : > { %v618_v46 = vmul.f32 %v610_v33, %v554_v58  ;;  %v606_v49 = vadd.f32 1.0, %v1384_v37  ;;  %v893_v50 = vmul.f32 %v1770_v23, %v884_v40  ;;  %689 = vst.msk [vmem:[#allocation4 + $0x18] sm:$0xff] %vm481_vm0, %v653_v44  ;;  %v816_v56 = vmul.f32 %v884_v40, %v1681_v1 }
  0xcb   : > { %1385 = vtanh.f32 %v591_v45  ;;  %v875_v55 = vadd.f32 %v867_v32, %v858_v35  ;;  %v799_v12 = vadd.f32 %v791_v38, %v782_v51  ;;  %v733_v2 = vadd.f32 %v725_v39, %v716_v57  ;;  %v1841_v44 = vld [vmem:[#allocation3 + $0x38] sm:$0xff] }
  0xcc   : > { %v629_v59 = vrot.slane %v618_v46, 7  ;;  %v648_v42 = vrot.slane %v618_v46, 1  ;;  %670 = vst.msk [vmem:[#allocation3 + $0x40] sm:$0xff] %vm481_vm0, %v618_v46  ;;  %v614_v58 = vmul.f32 %v606_v49, %v550_v3  ;;  %v750_v63 = vmul.f32 %v884_v40, %v1663_v53 }
  0xcd   : > { %v901_v62 = vadd.f32 %v893_v50, %v875_v55  ;;  %v786_v4 = vmul.f32 %v1670_v60, %v1793_v52  ;;  %v551_v13 = vmul.f32 0.5, %v1736_v54  ;;  %v757_v14 = vadd.f32 %v749_v19, %v732_v18  ;;  %v1823_v21 = vld [vmem:[#allocation3 + $0x18] sm:$0xff] }
  0xce   : > { %v639_v6 = vsel %vm621_vm1, %v629_v59, 0.0  ;;  %v658_v3 = vsel %vm640_vm2, %v648_v42, 0.0  ;;  %v625_v7 = vrot.slane %v614_v58, 7  ;;  %v644_v8 = vrot.slane %v614_v58, 1  ;;  %666 = vst.msk [vmem:[#allocation3 + $0x20] sm:$0xff] %vm481_vm0, %v614_v58  ;;  %v1814_v11 = vld [vmem:[#allocation2 + $0x38] sm:$0xff] }
  0xcf   : > { %682 = vst.msk [vmem:[#allocation2 + $0x40] sm:$0xff] %vm481_vm0, %v639_v6  ;;  %v909_v10 = vadd.f32 %v901_v62, %v831_v34  ;;  %v824_v15 = vadd.f32 %v816_v56, %v799_v12  ;;  %v758_v22 = vadd.f32 %v750_v63, %v733_v2  ;;  %v803_v26 = vadd.f32 %v795_v25, %v786_v4 }
  0xd0   : > { %694 = vst.msk [vmem:[#allocation4 + $0x40] sm:$0xff] %vm481_vm0, %v658_v3  ;;  %v635_v16 = vsel %vm621_vm1, %v625_v7, 0.0  ;;  %v654_v20 = vsel %vm640_vm2, %v644_v8, 0.0  ;;  %v850_v27 = vld [vmem:[#allocation2 + $0x18] sm:$0xff]  ;;  %v868_v18 = vmul.f32 %v1711_v29, %v1823_v21  ;;  %v820_v19 = vmul.f32 %v1681_v1, %v1807_v5 }
  0xd1   : > { %v1386_v24 = vpop.eup %1385  ;;  %678 = vst.msk [vmem:[#allocation2 + $0x20] sm:$0xff] %vm481_vm0, %v635_v16  ;;  %v921_v54 = vadd.f32 %v1802_v0, %v909_v10  ;;  %v863_v30 = vmul.f32 %v1708_v28, %v1814_v11  ;;  %v859_v25 = vmul.f32 %v1708_v28, %v850_v27  ;;  %v885_v33 = vld [vmem:[#allocation4 + $0x18] sm:$0xff]  ;;  %v783_v34 = vmul.f32 %v850_v27, %v1670_v60 }
  0xd2   : > { %690 = vst.msk [vmem:[#allocation4 + $0x20] sm:$0xff] %vm481_vm0, %v654_v20  ;;  %v607_v32 = vadd.f32 1.0, %v1386_v24  ;;  %v792_v36 = vmul.f32 %v1823_v21, %v1673_v61  ;;  %v832_v37 = vadd.f32 %v824_v15, %v757_v14  ;;  %v717_v43 = vmul.f32 %v850_v27, %v1650_v41 }
  0xd3   : > { %v1838_v38 = vmul.f32 0.5, %v921_v54  ;;  %v937_v39 = vmul.f32 0.044715, %v921_v54  ;;  %v876_v35 = vadd.f32 %v868_v18, %v859_v25  ;;  %v894_v40 = vmul.f32 %v1770_v23, %v885_v33 }
  0xd4   : > { %v615_v45 = vmul.f32 %v607_v32, %v551_v13  ;;  %v800_v46 = vadd.f32 %v792_v36, %v783_v34  ;;  %v817_v50 = vmul.f32 %v885_v33, %v1681_v1  ;;  %v726_v55 = vmul.f32 %v1823_v21, %v1659_v48  ;;  %v1861_v13 = vld [vmem:[#allocation4 + $0x38] sm:$0xff] }
  0xd5   : > { %v945_v49 = vmul.f32 %v937_v39, %v921_v54  ;;  %v1845_v51 = vld [vmem:[#allocation3 + $0x20] sm:$0xff]  ;;  %v751_v56 = vmul.f32 %v885_v33, %v1663_v53  ;;  %v902_v42 = vadd.f32 %v894_v40, %v876_v35  ;;  %v872_v58 = vmul.f32 %v1711_v29, %v1841_v44 }
  0xd6   : > { %v626_v57 = vrot.slane %v615_v45, 7  ;;  %v645_v59 = vrot.slane %v615_v45, 1  ;;  %667 = vst.msk [vmem:[#allocation3 + $0x28] sm:$0xff] %vm481_vm0, %v615_v45  ;;  %v825_v62 = vadd.f32 %v817_v50, %v800_v46  ;;  %v869_v2 = vmul.f32 %v1711_v29, %v1845_v51 }
  0xd7   : > { %v953_v12 = vmul.f32 %v945_v49, %v921_v54  ;;  %v1855_v63 = vadd.f32 %v820_v19, %v803_v26  ;;  %v910_v3 = vadd.f32 %v902_v42, %v832_v37  ;;  %v734_v8 = vadd.f32 %v726_v55, %v717_v43 }
  0xd8   : > { %v636_v4 = vsel %vm621_vm1, %v626_v57, 0.0  ;;  %v655_v6 = vsel %vm640_vm2, %v645_v59, 0.0  ;;  %v851_v7 = vld [vmem:[#allocation2 + $0x20] sm:$0xff]  ;;  %v793_v20 = vmul.f32 %v1845_v51, %v1673_v61  ;;  %v880_v27 = vadd.f32 %v872_v58, %v863_v30 }
  0xd9   : > { %679 = vst.msk [vmem:[#allocation2 + $0x28] sm:$0xff] %vm481_vm0, %v636_v4  ;;  %v961_v10 = vadd.f32 %v953_v12, %v921_v54  ;;  %v860_v14 = vmul.f32 %v1708_v28, %v851_v7  ;;  %v886_v15 = vld [vmem:[#allocation4 + $0x20] sm:$0xff]  ;;  %v784_v16 = vmul.f32 %v851_v7, %v1670_v60  ;;  %v1870_v31 = vadd.f32 %v1802_v0, %v910_v3 }
  0xda   : > { %691 = vst.msk [vmem:[#allocation4 + $0x28] sm:$0xff] %vm481_vm0, %v655_v6  ;;  %v895_v26 = vmul.f32 %v1770_v23, %v886_v15  ;;  %v818_v24 = vmul.f32 %v886_v15, %v1681_v1  ;;  %v898_v32 = vmul.f32 %v1770_v23, %v1861_v13  ;;  %v833_v33 = vadd.f32 %v825_v62, %v758_v22 }
  0xdb   : > { %v969_v18 = vmul.f32 0.7978846, %v961_v10  ;;  %v877_v54 = vadd.f32 %v869_v2, %v860_v14  ;;  %v801_v19 = vadd.f32 %v793_v20, %v784_v16  ;;  %v938_v25 = vmul.f32 0.044715, %v1870_v31 }
  0xdc   : > { %v718_v34 = vmul.f32 %v851_v7, %v1650_v41  ;;  %v727_v36 = vmul.f32 %v1845_v51, %v1659_v48  ;;  %v759_v37 = vadd.f32 %v751_v56, %v734_v8  ;;  %v906_v40 = vadd.f32 %v898_v32, %v880_v27 }
  0xdd   : > { %1387 = vtanh.f32 %v969_v18  ;;  %v903_v39 = vadd.f32 %v895_v26, %v877_v54  ;;  %v826_v43 = vadd.f32 %v818_v24, %v801_v19  ;;  %v1880_v45 = vld [vmem:[#allocation3 + $0x28] sm:$0xff]  ;;  %v946_v30 = vmul.f32 %v938_v25, %v1870_v31 }
  0xde   : > { %v870_v35 = vmul.f32 %v1711_v29, %v1880_v45  ;;  %v735_v46 = vadd.f32 %v727_v36, %v718_v34  ;;  %v728_v50 = vmul.f32 %v1880_v45, %v1659_v48  ;;  %v752_v55 = vmul.f32 %v886_v15, %v1663_v53 }
  0xdf   : > { %v911_v49 = vadd.f32 %v903_v39, %v833_v33  ;;  %v834_v22 = vadd.f32 %v826_v43, %v759_v37  ;;  %v954_v57 = vmul.f32 %v946_v30, %v1870_v31  ;;  %v794_v59 = vmul.f32 %v1880_v45, %v1673_v61 }
  0xe0   : > { %v852_v56 = vld [vmem:[#allocation2 + $0x28] sm:$0xff]  ;;  %v862_v42 = vmul.f32 %v1708_v28, %v1793_v52  ;;  %v871_v58 = vmul.f32 %v1711_v29, %v1755_v9  ;;  %v897_v6 = vmul.f32 %v1770_v23, %v1807_v5  ;;  %v760_v8 = vadd.f32 %v752_v55, %v735_v46 }
  0xe1   : > { %v923_v12 = vadd.f32 %v1802_v0, %v911_v49  ;;  %v861_v62 = vmul.f32 %v1708_v28, %v852_v56  ;;  %v887_v2 = vld [vmem:[#allocation4 + $0x28] sm:$0xff]  ;;  %v719_v4 = vmul.f32 %v852_v56, %v1650_v41  ;;  %v962_v3 = vadd.f32 %v954_v57, %v1870_v31 }
  0xe2   : > { %v896_v7 = vmul.f32 %v1770_v23, %v887_v2  ;;  %v785_v10 = vmul.f32 %v852_v56, %v1670_v60  ;;  %v753_v26 = vmul.f32 %v887_v2, %v1663_v53  ;;  %v819_v54 = vmul.f32 %v887_v2, %v1681_v1 }
  0xe3   : > { %v1388_v14 = vpop.eup %1387  ;;  %v939_v15 = vmul.f32 0.044715, %v923_v12  ;;  %v878_v16 = vadd.f32 %v870_v35, %v861_v62  ;;  %v736_v20 = vadd.f32 %v728_v50, %v719_v4  ;;  %v970_v27 = vmul.f32 0.7978846, %v962_v3 }
  0xe4   : > { %v985_v24 = vadd.f32 1.0, %v1388_v14  ;;  %v802_v18 = vadd.f32 %v794_v59, %v785_v10  ;;  %v879_v33 = vadd.f32 %v871_v58, %v862_v42  ;;  %v720_v39 = vmul.f32 %v1793_v52, %v1650_v41  ;;  %v855_v42 = vld [vmem:[#allocation2 + $0x40] sm:$0xff] }
  0xe5   : > { %v947_v19 = vmul.f32 %v939_v15, %v923_v12  ;;  %v904_v32 = vadd.f32 %v896_v7, %v878_v16  ;;  %v761_v25 = vadd.f32 %v753_v26, %v736_v20  ;;  %1389 = vtanh.f32 %v970_v27  ;;  %v1932_v7 = vld [vmem:[#allocation3 + $0x40] sm:$0xff] }
  0xe6   : > { %v993_v34 = vmul.f32 %v985_v24, %v1838_v38  ;;  %v827_v36 = vadd.f32 %v819_v54, %v802_v18  ;;  %v905_v35 = vadd.f32 %v897_v6, %v879_v33  ;;  %v729_v50 = vmul.f32 %v1755_v9, %v1659_v48 }
  0xe7   : > { %v955_v37 = vmul.f32 %v947_v19, %v923_v12  ;;  %v912_v43 = vadd.f32 %v904_v32, %v834_v22  ;;  %v836_v30 = vadd.f32 %v1855_v63, %v761_v25  ;;  %v754_v55 = vmul.f32 %v1807_v5, %v1663_v53 }
  0xe8   : > { %v1001_v46 = vadd.f32 %v993_v34, %v1730_v47  ;;  %v835_v49 = vadd.f32 %v827_v36, %v760_v8  ;;  %v787_v52 = vmul.f32 %v1814_v11, %v1670_v60  ;;  %v737_v22 = vadd.f32 %v729_v50, %v720_v39  ;;  %v890_v8 = vld [vmem:[#allocation4 + $0x40] sm:$0xff]  ;;  %v856_v50 = vld [vmem:[#allocation2 + $0x48] sm:$0xff] }
  0xe9   : > { %v963_v38 = vadd.f32 %v955_v37, %v923_v12  ;;  %v1915_v57 = vadd.f32 %v1802_v0, %v912_v43  ;;  %v914_v56 = vadd.f32 %v906_v40, %v836_v30  ;;  %v796_v47 = vmul.f32 %v1841_v44, %v1673_v61 }
  0xea   : > { %1305 = vmatmul.msk.f32.vlgmr.msra.gmra.mxu1 %vm481_vm0, %v1001_v46  ;;  %v913_v63 = vadd.f32 %v905_v35, %v835_v49  ;;  %v821_v59 = vmul.f32 %v1861_v13, %v1681_v1  ;;  %v930_v2 = vmul.f32 0.5, %v1870_v31  ;;  %v931_v4 = vmul.f32 0.5, %v923_v12 }
  0xeb   : > { %v971_v5 = vmul.f32 0.7978846, %v963_v38  ;;  %v940_v58 = vmul.f32 0.044715, %v1915_v57  ;;  %v1926_v62 = vadd.f32 %v1802_v0, %v914_v56  ;;  %v1390_v40 = vpop.eup %1389  ;;  %v804_v3 = vadd.f32 %v796_v47, %v787_v52  ;;  %v891_v52 = vld [vmem:[#allocation4 + $0x48] sm:$0xff] }
  0xec   : > { %v1930_v6 = vadd.f32 %v1802_v0, %v913_v63  ;;  %v986_v10 = vadd.f32 1.0, %v1390_v40  ;;  %v864_v15 = vmul.f32 %v1708_v28, %v855_v42  ;;  %v762_v26 = vadd.f32 %v754_v55, %v737_v22 }
  0xed   : > { %1391 = vtanh.f32 %v971_v5  ;;  %v948_v14 = vmul.f32 %v940_v58, %v1915_v57  ;;  %v942_v16 = vmul.f32 0.044715, %v1926_v62  ;;  %v829_v31 = vadd.f32 %v821_v59, %v804_v3 }
  0xee   : > { %v941_v20 = vmul.f32 0.044715, %v1930_v6  ;;  %v994_v12 = vmul.f32 %v986_v10, %v930_v2  ;;  %v873_v27 = vmul.f32 %v1711_v29, %v1932_v7  ;;  %v899_v18 = vmul.f32 %v1770_v23, %v890_v8 }
  0xef   : > { %v956_v24 = vmul.f32 %v948_v14, %v1915_v57  ;;  %v950_v54 = vmul.f32 %v942_v16, %v1926_v62  ;;  %v837_v32 = vadd.f32 %v829_v31, %v762_v26  ;;  %v721_v25 = vmul.f32 %v1814_v11, %v1650_v41 }
  0xf0   : > { %v949_v19 = vmul.f32 %v941_v20, %v1930_v6  ;;  %v1002_v33 = vadd.f32 %v994_v12, %v1760_v17  ;;  %v881_v36 = vadd.f32 %v873_v27, %v864_v15  ;;  %v730_v39 = vmul.f32 %v1841_v44, %v1659_v48 }
  0xf1   : > { %v964_v34 = vadd.f32 %v956_v24, %v1915_v57  ;;  %v958_v37 = vmul.f32 %v950_v54, %v1926_v62  ;;  %v755_v30 = vmul.f32 %v1861_v13, %v1663_v53  ;;  %v788_v35 = vmul.f32 %v855_v42, %v1670_v60  ;;  %v847_v53 = vld [vmem:[#allocation3 + $0x48] sm:$0xff] }
  0xf2   : > { %v957_v43 = vmul.f32 %v949_v19, %v1930_v6  ;;  %1306 = vmatmul.msk.f32.gmra.mxu1 %vm481_vm0, %v1002_v33  ;;  %v907_v17 = vadd.f32 %v899_v18, %v881_v36  ;;  %v738_v11 = vadd.f32 %v730_v39, %v721_v25  ;;  %v797_v49 = vmul.f32 %v1932_v7, %v1673_v61 }
  0xf3   : > { %v1392_v46 = vpop.eup %1391  ;;  %v972_v41 = vmul.f32 0.7978846, %v964_v34  ;;  %v966_v55 = vadd.f32 %v958_v37, %v1926_v62  ;;  %v822_v56 = vmul.f32 %v890_v8, %v1681_v1  ;;  %v865_v59 = vmul.f32 %v1708_v28, %v856_v50  ;;  %v1115_v50 = vld [vmem:[%s2081_s8 + $0x18] sm:$0xff] }
  0xf4   : > { %v987_v48 = vadd.f32 1.0, %v1392_v46  ;;  %v965_v38 = vadd.f32 %v957_v43, %v1930_v6  ;;  %v915_v60 = vadd.f32 %v907_v17, %v837_v32  ;;  %v805_v13 = vadd.f32 %v797_v49, %v788_v35  ;;  %1132 = vmatpush.msrb.mxu2 %v1115_v50 }
  0xf5   : > { %1393 = vtanh.f32 %v972_v41  ;;  %v974_v22 = vmul.f32 0.7978846, %v966_v55  ;;  %v874_v5 = vmul.f32 %v1711_v29, %v847_v53  ;;  %v763_v40 = vadd.f32 %v755_v30, %v738_v11 }
  0xf6   : > { %v995_v63 = vmul.f32 %v987_v48, %v931_v4  ;;  %v973_v47 = vmul.f32 0.7978846, %v965_v38  ;;  %v927_v61 = vadd.f32 %v1802_v0, %v915_v60  ;;  %v830_v42 = vadd.f32 %v822_v56, %v805_v13 }
  0xf7   : > { %1395 = vtanh.f32 %v974_v22  ;;  %v900_v1 = vmul.f32 %v1770_v23, %v891_v52  ;;  %v882_v8 = vadd.f32 %v874_v5, %v865_v59  ;;  %v932_v28 = vmul.f32 0.5, %v1915_v57  ;;  %v1113_v22 = vld [vmem:[%s2081_s8 + $0x8] sm:$0xff] }
  0xf8   : > { %v1003_v58 = vadd.f32 %v995_v63, %v1823_v21  ;;  %1397 = vtanh.f32 %v973_v47  ;;  %v943_v2 = vmul.f32 0.044715, %v927_v61  ;;  %v838_v3 = vadd.f32 %v830_v42, %v763_v40  ;;  %v1114_v63 = vld [vmem:[%s2081_s8 + $0x10] sm:$0xff]  ;;  %v1112_v47 = vld [vmem:[%s2081_s8] sm:$0xff] }
  0xf9   : > { %v908_v15 = vadd.f32 %v900_v1, %v882_v8  ;;  %v934_v31 = vmul.f32 0.5, %v1926_v62  ;;  %v933_v25 = vmul.f32 0.5, %v1930_v6  ;;  %v935_v39 = vmul.f32 0.5, %v927_v61  ;;  %1133 = vmatpush.msrb.mxu2 %v1114_v63 }
  0xfa   : > { %1307 = vmatmul.msk.f32.gmra.mxu1 %vm481_vm0, %v1003_v58  ;;  %v951_v10 = vmul.f32 %v943_v2, %v927_v61 }
  0xfb   : > { %v1394_v4 = vpop.eup %1393  ;;  %v916_v21 = vadd.f32 %v908_v15, %v838_v3  ;;  %1134 = vmatpush.msrb.mxu2 %v1113_v22 }
  0xfc   : > { %v988_v14 = vadd.f32 1.0, %v1394_v4  ;;  %v959_v16 = vmul.f32 %v951_v10, %v927_v61 }
  0xfd   : > { %v1396_v29 = vpop.eup %1395  ;;  %v928_v27 = vadd.f32 %v1802_v0, %v916_v21  ;;  %1135 = vmatpush.msrb.mxu2 %v1112_v47 }
  0xfe   : > { %v996_v20 = vmul.f32 %v988_v14, %v932_v28  ;;  %v1398_v26 = vpop.eup %1397  ;;  %v990_v23 = vadd.f32 1.0, %v1396_v29  ;;  %v967_v12 = vadd.f32 %v959_v16, %v927_v61 }
  0xff   : > { %v989_v54 = vadd.f32 1.0, %v1398_v26  ;;  %v944_v32 = vmul.f32 0.044715, %v928_v27  ;;  %v936_v35 = vmul.f32 0.5, %v928_v27 }
 0x100   : > { %v1004_v24 = vadd.f32 %v996_v20, %v1845_v51  ;;  %v998_v18 = vmul.f32 %v990_v23, %v934_v31  ;;  %v975_v19 = vmul.f32 0.7978846, %v967_v12 }
 0x101   : > { %v952_v33 = vmul.f32 %v944_v32, %v928_v27  ;;  %v997_v62 = vmul.f32 %v989_v54, %v933_v25  ;;  %v1149_v54 = vld [vmem:[%s2083_s10] sm:$0xff] }
 0x102   : > { %1308 = vmatmul.msk.f32.gmra.mxu1 %vm481_vm0, %v1004_v24  ;;  %v1006_v57 = vadd.f32 %v998_v18, %v1755_v9  ;;  %1399 = vtanh.f32 %v975_v19  ;;  %1170 = vmatpush.msrb.mxu3 %v1149_v54  ;;  %v1116_v19 = vld [vmem:[%s2082_s9] sm:$0x1] }
 0x103   : > { %v960_v34 = vmul.f32 %v952_v33, %v928_v27  ;;  %v1005_v0 = vadd.f32 %v997_v62, %v1880_v45  ;;  %v1370_v45 = vld [vmem:[%s2080_s7] ss:$0 sm:$0xff] }
 0x104   : > { %1310 = vmatmul.msk.f32.vlgmr.msra.gmra.mxu2 %vm481_vm0, %v1006_v57 }
 0x105   : > { %v968_v36 = vadd.f32 %v960_v34, %v928_v27 }
 0x107   : > { %v976_v43 = vmul.f32 0.7978846, %v968_v36 }
 0x108   : > { %v1400_v51 = vpop.eup %1399 }
 0x109   : > { %v991_v37 = vadd.f32 1.0, %v1400_v51  ;;  %1401 = vtanh.f32 %v976_v43  ;;  %v1150_v43 = vld [vmem:[%s2084_s11] sm:$0x1] }
 0x10a   : > { %1309 = vmatmul.msk.f32.gmra.mxu1 %vm481_vm0, %v1005_v0 }
 0x10b   : > { %v999_v30 = vmul.f32 %v991_v37, %v935_v39 }
 0x10d   : > { %v1007_v9 = vadd.f32 %v999_v30, %v1841_v44 }
 0x10f   : > { %1311 = vmatmul.msk.f32.gmra.mxu2 %vm481_vm0, %v1007_v9  ;;  %v1402_v6 = vpop.eup %1401  ;;  %v1175_v9 = vld [vmem:[%s459_s24] sm:$0x1]  ;;  %s1425_s24 = scalar_lea.hbm %s2086_s13, 2 }
 0x110   : > { %v992_v46 = vadd.f32 1.0, %v1402_v6  ;;  %p1427_p1 = scmp.lt.s32.totalorder %s1425_s24, %s1421_s29 }
 0x112   : > { %v1000_v41 = vmul.f32 %v992_v46, %v936_v35  ;;  %p1428_p2 = por %p1427_p1, %p1426_p0 }
 0x114   : > { %v1008_v17 = vadd.f32 %v1000_v41, %v1932_v7  ;;  %p1429_p3 = pnand %p1428_p2, %p1424_p13 }
 0x117   : > { %1312 = vmatmul.msk.f32.gmra.mxu2 %vm481_vm0, %v1008_v17 }
 0x167   : > { %v1058_v44 = vpop.f32.mrf.mxu1 }
 0x168   : > { %v1059_v11 = vadd.f32 %v1370_v45, %v1058_v44 }
 0x16a   : > { %1082 = vst.msk [vmem:[%s1989_s23] sm:$0xff] %vm481_vm0, %v1059_v11  ;;  %v1090_v61 = vsel %vm481_vm0, %v1059_v11, 0.0 }
 0x16f   : > { %v1061_v7 = vpop.f32.mrf.mxu1 }
 0x170   : > { %v1062_v49 = vadd.f32 %v1370_v45, %v1061_v7 }
 0x172   : > { %1083 = vst.msk [vmem:[%s1989_s23 + $0x8] sm:$0xff] %vm481_vm0, %v1062_v49  ;;  %v1091_v59 = vsel %vm481_vm0, %v1062_v49, 0.0 }
 0x173   : > { %v1092_v5 = vadd.f32 %v1091_v59, %v1090_v61 }
 0x177   : > { %v1064_v48 = vpop.f32.mrf.mxu1 }
 0x178   : > { %v1065_v55 = vadd.f32 %v1370_v45, %v1064_v48 }
 0x17a   : > { %1084 = vst.msk [vmem:[%s1989_s23 + $0x10] sm:$0xff] %vm481_vm0, %v1065_v55  ;;  %v1093_v42 = vsel %vm481_vm0, %v1065_v55, 0.0 }
 0x17b   : > { %v1094_v1 = vadd.f32 %v1093_v42, %v1092_v5 }
 0x17f   : > { %v1067_v38 = vpop.f32.mrf.mxu1 }
 0x180   : > { %v1068_v56 = vadd.f32 %v1370_v45, %v1067_v38 }
 0x182   : > { %1085 = vst.msk [vmem:[%s1989_s23 + $0x18] sm:$0xff] %vm481_vm0, %v1068_v56  ;;  %v1095_v58 = vsel %vm481_vm0, %v1068_v56, 0.0 }
 0x183   : > { %v1096_v8 = vadd.f32 %v1095_v58, %v1094_v1 }
 0x187   : > { %v1070_v53 = vpop.f32.mrf.mxu1  ;;  %v1073_v60 = vpop.f32.mrf.mxu2 }
 0x188   : > { %v1071_v13 = vadd.f32 %v1370_v45, %v1070_v53  ;;  %v1074_v52 = vadd.f32 %v1370_v45, %v1073_v60 }
 0x18a   : > { %1086 = vst.msk [vmem:[%s1989_s23 + $0x20] sm:$0xff] %vm481_vm0, %v1071_v13  ;;  %v1097_v3 = vsel %vm481_vm0, %v1071_v13, 0.0  ;;  %v1099_v10 = vsel %vm481_vm0, %v1074_v52, 0.0 }
 0x18b   : > { %1087 = vst.msk [vmem:[%s1989_s23 + $0x28] sm:$0xff] %vm481_vm0, %v1074_v52  ;;  %v1098_v4 = vadd.f32 %v1097_v3, %v1096_v8 }
 0x18d   : > { %v1100_v14 = vadd.f32 %v1099_v10, %v1098_v4 }
 0x192   : > { %v1076_v40 = vpop.f32.mrf.mxu2 }
 0x193   : > { %v1077_v2 = vadd.f32 %v1370_v45, %v1076_v40 }
 0x195   : > { %1088 = vst.msk [vmem:[%s1989_s23 + $0x30] sm:$0xff] %vm481_vm0, %v1077_v2  ;;  %v1101_v28 = vsel %vm481_vm0, %v1077_v2, 0.0 }
 0x196   : > { %v1102_v29 = vadd.f32 %v1101_v28, %v1100_v14 }
 0x19a   : > { %v1079_v15 = vpop.f32.mrf.mxu2 }
 0x19b   : > { %v1080_v16 = vadd.f32 %v1370_v45, %v1079_v15 }
 0x19d   : > { %1089 = vst.msk [vmem:[%s1989_s23 + $0x38] sm:$0xff] %vm481_vm0, %v1080_v16  ;;  %v1103_v20 = vsel %vm481_vm0, %v1080_v16, 0.0  ;;  %s450_s23 = sand.u32 1, %s1459_s26  }
 0x19e   : > { %v1104_v21 = vadd.f32 %v1103_v20, %v1102_v29  ;;  %s451_s2 = scalar_lea.vmem [#allocation5], %s450_s23  ;;  %s1185_s15 = scalar_lea.sflag [#allocation6], %s450_s23 }
 0x19f   : > { %s1198_s3 = sshll.u32 %s451_s2, 4  ;;  %s1199_s3 = int_to_ptr.vmem [resolvable:$true] %s1198_s3 }
 0x1a0   : > { %v1105_v26 = vrot.slane %v1104_v21, 4 }
 0x1a2   : > { %v1106_v31 = vadd.f32 %v1105_v26, %v1104_v21 }
 0x1a4   : > { %v1107_v23 = vrot.slane %v1106_v31, 2 }
 0x1a6   : > { %v1108_v12 = vadd.f32 %v1107_v23, %v1106_v31 }
 0x1a8   : > { %v1109_v24 = vrot.slane %v1108_v12, 1 }
 0x1aa   : > { %v1110_v27 = vadd.f32 %v1109_v24, %v1108_v12 }
 0x1ac   : > { %v1111_v18 = vmul.f32 0.015625, %v1110_v27 }
 0x1ae   : > { %1313 = vmatmul.msk.f32.vlgmr.msrb.gmra.mxu2 %vm481_vm0, %v1111_v18 }
 0x231   : > { %v1137_v32 = vpop.f32.mrf.mxu2 }
 0x232   : > { %v1138_v57 = vadd.f32 %v1137_v32, %v1116_v19 }
 0x234   : > { %v1141_v25 = vmul.f32 0.044715, %v1138_v57  ;;  %v1140_v0 = vmul.f32 0.5, %v1138_v57 }
 0x236   : > { %v1142_v33 = vmul.f32 %v1141_v25, %v1138_v57 }
 0x238   : > { %v1143_v62 = vmul.f32 %v1142_v33, %v1138_v57 }
 0x23a   : > { %v1144_v34 = vadd.f32 %v1143_v62, %v1138_v57 }
 0x23c   : > { %v1145_v36 = vmul.f32 0.7978846, %v1144_v34 }
 0x23e   : > { %1403 = vtanh.f32 %v1145_v36 }
 0x244   : > { %v1404_v51 = vpop.eup %1403 }
 0x245   : > { %v1147_v39 = vadd.f32 1.0, %v1404_v51 }
 0x247   : > { %v1148_v37 = vmul.f32 %v1147_v39, %v1140_v0 }
 0x249   : > { %1314 = vmatmul.msk.f32.vlgmr.msrb.gmra.mxu3 %vm1151_vm3, %v1148_v37 }
 0x2cc   : > { %v1172_v30 = vpop.f32.mrf.mxu3 }
 0x2cd   : > { %v1173_v6 = vadd.f32 %v1172_v30, %v1150_v43 }
 0x2cf   : > { %v1176_v35 = vmul.f32 %v1175_v9, %v1173_v6 }
 0x2d1   : > { %1178 = vst.msk [vmem:[%s451_s2] sm:$0x1] %vm1177_vm4, %v1176_v35 }
 0x2d2   : > { %1432 = shalt.err (!%p1429_p3)
}
 0x2d3   : > { %1327 = dma.vmem_to_hbm [thread:$0]  (%p1578_p5), %s1199_s3, 16, %s1201_s4, %s1185_s15  }
 0x2d4 PF: > { %p1333_p4 = scmp.ge.s32.totalorder %s1467_s28, 2  ;;  %s1220_s2 = sand.u32 1, %s1455_s25  }
 0x2d5   : > { %s1221_s23 = scalar_lea.sflag [#allocation6], %s1220_s2 }
 0x2d6   : > { %p1330_p7 = pnand %p1333_p4, %p1582_p6 }
 0x2d8   : > { %p1331_p8 = pneg %p1330_p7 }
 0x2da   : > { %1450 = dma.done.wait (%p1331_p8), %s1221_s23, 16  }
 0x2db   : > { %1452 = vsyncadd (%p1331_p8), %s1221_s23, 4294967280  ;;  %s2098_s17 = sld [smem:[#allocation8_spill]]  ;;  %p24_p9 = scmp.ge.s32.totalorder %s1565_s14, 4  }
 0x2dc   : > { %s2099_s25 = smov %s1459_s26  ;;  %s2100_s26 = smov %s1463_s27 }
 0x2dd   : > { %s2102_s28 = smov %s1565_s14  ;;  %26 = sbr.rel (!%p24_p9) target bundleno = 8 (0x8), region = 127 }
 0x2e1   : > { %s2101_s27 = smov %s2098_s17 }
 0x2e2   :  { %1226 = vsyncpa [#allocation6], 1 }
 0x2e3   :  { %1228 = vsyncpa [#allocation6 + $0x1], 1 }

</bundles_post_ra>
